<compile_context>
chip_gen: v5e
topology: v5e:2x2
jax: 0.10.0
libtpu: 0.0.40
codegen_flags: <defaults>
</compile_context>

<pallas_src>
import functools
import math

import jax
import jax.numpy as jnp
from jax import lax
from jax.experimental import pallas as pl
from jax.experimental.pallas import tpu as pltpu

# ------------------------- mini-BERT configuration -------------------------
HIDDEN = 32
N_HEADS = 4
HEAD_DIM = HIDDEN // N_HEADS
N_LAYERS = 2
INTERMEDIATE = 64
VOCAB = 100
MAX_POS = 16
TYPE_VOCAB = 2
N_CLASSES = 3
LN_EPS = 1e-12
LANE = 128                                   # lane-dense padded classifier width
ATT_SCALE = 1.0 / math.sqrt(HEAD_DIM)

# packed per-layer small-vector rows (lvec[l, ROW_*, :])
ROW_ATTN_BIAS = 0    # v_b @ ao_w + ao_b
ROW_AO_LN_G = 1
ROW_AO_LN_B = 2
ROW_FF1_B = 3
ROW_FF2_B = 4
ROW_FF_LN_G = 5
ROW_FF_LN_B = 6
N_LVEC_ROWS = 8      # padded to one full (8,128) sublane tile per layer

# packed global small-vector rows (gvec[ROW_*, :])
GROW_EMB_LN_G = 0
GROW_EMB_LN_B = 1
GROW_POOL_B = 2
GROW_CLS_B = 3


# ------------------------------ in-kernel math ------------------------------
def _gelu(x):
    # tanh-approximate GELU (EUP friendly).
    # TODO(synk): HF BERT's default is exact erf GELU; tanh approx differs ~1e-3.
    return 0.5 * x * (1.0 + jnp.tanh(0.7978845608028654 * (x + 0.044715 * x * x * x)))


def _layernorm(x, g, b):
    mean = jnp.mean(x, axis=-1, keepdims=True)
    var = jnp.mean(jnp.square(x - mean), axis=-1, keepdims=True)
    return (x - mean) * lax.rsqrt(var + LN_EPS) * g + b


# ------------------------------ fused kernel --------------------------------
def fused_bert_kernel(ids_ref, mask_ref, wemb_ref, pte_ref, attw_ref, kb_ref,
                      f1w_ref, f2w_ref, lvec_ref, poolw_ref, clsw_ref, gvec_ref,
                      out_ref, *, batch, seq):
    """Single step: embeddings -> 2 layers -> pooler -> logits on a [B*S,H] slab."""
    f32 = jnp.float32
    BS = batch * seq

    # ---- embeddings: token gather as one-hot matmul (stays in VMEM / on MXU) ----
    ids = ids_ref[...]                                                 # [BS, 1] int32
    vocab_iota = lax.broadcasted_iota(jnp.int32, (BS, VOCAB), 1)
    onehot = (vocab_iota == ids).astype(f32)                           # [BS, VOCAB]
    x = jnp.dot(onehot, wemb_ref[...], preferred_element_type=f32) + pte_ref[...]

    gvec = gvec_ref[...]                                               # [4, LANE]
    x = _layernorm(x, gvec[GROW_EMB_LN_G:GROW_EMB_LN_G + 1, :HIDDEN],
                   gvec[GROW_EMB_LN_B:GROW_EMB_LN_B + 1, :HIDDEN])     # [BS, HIDDEN]

    mask = mask_ref[...]                                               # [BS, BS] additive

    for l in range(N_LAYERS):                                          # static unroll, L=2
        lv = lvec_ref[l]                                               # [8, LANE]
        h_in = x

        # key-side bias correction for all heads at once: [N_HEADS, BS]
        kterms = lax.dot_general(kb_ref[l], h_in, (((1,), (1,)), ((), ())),
                                 preferred_element_type=f32)

        acc = jnp.zeros((BS, HIDDEN), f32)
        for h in range(N_HEADS):                                       # static unroll, 4 heads
            w = (l * N_HEADS + h) * 2
            # scores_h = x (Wq_h Wk_h^T / sqrt(d)) x^T + (x Wk_h bq_h / sqrt(d))^T + mask
            xq = jnp.dot(h_in, attw_ref[w], preferred_element_type=f32)       # [BS, HIDDEN]
            s = lax.dot_general(xq, h_in, (((1,), (1,)), ((), ())),
                                preferred_element_type=f32)                    # [BS, BS]
            s = s + kterms[h:h + 1, :] + mask
            s = s - jnp.max(s, axis=-1, keepdims=True)
            p = jnp.exp(s)
            p = p / jnp.sum(p, axis=-1, keepdims=True)                          # exact softmax
            # (p_h @ v_h) @ Wo_h  ==  p_h @ (x @ VO_h)  (+ folded bias in ROW_ATTN_BIAS)
            xv = jnp.dot(h_in, attw_ref[w + 1], preferred_element_type=f32)     # [BS, HIDDEN]
            acc = acc + jnp.dot(p, xv, preferred_element_type=f32)

        attn_out = acc + lv[ROW_ATTN_BIAS:ROW_ATTN_BIAS + 1, :HIDDEN]
        x = _layernorm(attn_out + h_in,
                       lv[ROW_AO_LN_G:ROW_AO_LN_G + 1, :HIDDEN],
                       lv[ROW_AO_LN_B:ROW_AO_LN_B + 1, :HIDDEN])

        ff = jnp.dot(x, f1w_ref[l], preferred_element_type=f32) \
            + lv[ROW_FF1_B:ROW_FF1_B + 1, :INTERMEDIATE]
        ff = _gelu(ff)
        ff = jnp.dot(ff, f2w_ref[l], preferred_element_type=f32) \
            + lv[ROW_FF2_B:ROW_FF2_B + 1, :HIDDEN]
        x = _layernorm(ff + x,
                       lv[ROW_FF_LN_G:ROW_FF_LN_G + 1, :HIDDEN],
                       lv[ROW_FF_LN_B:ROW_FF_LN_B + 1, :HIDDEN])

    # ---- BertPooler: CLS rows (positions 0, S, 2S, ...) picked via a tiny MXU matmul ----
    col = lax.broadcasted_iota(jnp.int32, (batch, BS), 1)
    row = lax.broadcasted_iota(jnp.int32, (batch, BS), 0)
    sel = (col == row * seq).astype(f32)                                # [B, BS] selector
    cls_tok = jnp.dot(sel, x, preferred_element_type=f32)               # [B, HIDDEN]
    pooled = jnp.tanh(jnp.dot(cls_tok, poolw_ref[...], preferred_element_type=f32)
                      + gvec[GROW_POOL_B:GROW_POOL_B + 1, :HIDDEN])

    # nn.Dropout(p=0.3) is identity in eval mode.
    # TODO(synk): training-mode dropout would use pltpu.prng_seed + pltpu.prng_random_bits.

    logits = jnp.dot(pooled, clsw_ref[...], preferred_element_type=f32) \
        + gvec[GROW_CLS_B:GROW_CLS_B + 1, :]
    out_ref[...] = logits.astype(out_ref.dtype)                         # [B, LANE] lane-dense


# --------------------------- deterministic weights ---------------------------
def init_params(key):
    keys = iter(jax.random.split(key, 64))

    def nrm(shape):
        return 0.02 * jax.random.normal(next(keys), shape, jnp.float32)

    params = {
        "word_emb": nrm((VOCAB, HIDDEN)),
        "pos_emb": nrm((MAX_POS, HIDDEN)),
        "type_emb": nrm((TYPE_VOCAB, HIDDEN)),
        "emb_ln_g": jnp.ones((HIDDEN,), jnp.float32),
        "emb_ln_b": jnp.zeros((HIDDEN,), jnp.float32),
        "layers": [],
        "pool_w": nrm((HIDDEN, HIDDEN)),
        "pool_b": jnp.zeros((HIDDEN,), jnp.float32),
        "cls_w": nrm((HIDDEN, N_CLASSES)),
        "cls_b": jnp.zeros((N_CLASSES,), jnp.float32),
    }
    for _ in range(N_LAYERS):
        params["layers"].append({
            "q_w": nrm((HIDDEN, HIDDEN)), "q_b": jnp.zeros((HIDDEN,), jnp.float32),
            "k_w": nrm((HIDDEN, HIDDEN)), "k_b": jnp.zeros((HIDDEN,), jnp.float32),
            "v_w": nrm((HIDDEN, HIDDEN)), "v_b": jnp.zeros((HIDDEN,), jnp.float32),
            "ao_w": nrm((HIDDEN, HIDDEN)), "ao_b": jnp.zeros((HIDDEN,), jnp.float32),
            "ao_ln_g": jnp.ones((HIDDEN,), jnp.float32),
            "ao_ln_b": jnp.zeros((HIDDEN,), jnp.float32),
            "ff1_w": nrm((HIDDEN, INTERMEDIATE)), "ff1_b": jnp.zeros((INTERMEDIATE,), jnp.float32),
            "ff2_w": nrm((INTERMEDIATE, HIDDEN)), "ff2_b": jnp.zeros((HIDDEN,), jnp.float32),
            "ff_ln_g": jnp.ones((HIDDEN,), jnp.float32),
            "ff_ln_b": jnp.zeros((HIDDEN,), jnp.float32),
        })
    return params


# --------------------------------- forward ---------------------------------
def sentiment_classifier_forward(params, input_ids, attention_mask):
    B, S = input_ids.shape
    BS = B * S
    f32 = jnp.float32

    ids = input_ids.reshape(BS, 1).astype(jnp.int32)

    # Block-diagonal additive attention mask: batch separation + key padding (0 / -10000).
    batch_id = jnp.repeat(jnp.arange(B, dtype=jnp.int32), S)             # [BS]
    key_valid = attention_mask.reshape(BS).astype(f32)                   # [BS]
    allowed = (batch_id[:, None] == batch_id[None, :]) & (key_valid[None, :] > 0)
    add_mask = jnp.where(allowed, 0.0, -10000.0).astype(f32)             # [BS, BS]

    layers = params["layers"]

    # Trace-time merged per-head attention weights (constant-folded under jit):
    #   QK_h = Wq_h Wk_h^T / sqrt(d),   VO_h = Wv_h Wo_h,   kb_h = Wk_h bq_h / sqrt(d)
    att_blocks, kb_rows = [], []
    for lyr in layers:
        for h in range(N_HEADS):
            sl = slice(h * HEAD_DIM, (h + 1) * HEAD_DIM)
            wq, wk, wv = lyr["q_w"][:, sl], lyr["k_w"][:, sl], lyr["v_w"][:, sl]
            wo = lyr["ao_w"][sl, :]
            att_blocks.append((wq @ wk.T) * ATT_SCALE)
            att_blocks.append(wv @ wo)
            kb_rows.append((wk @ lyr["q_b"][sl]) * ATT_SCALE)
    attw = jnp.stack(att_blocks)                                          # [L*H*2, 32, 32]
    kb = jnp.stack(kb_rows).reshape(N_LAYERS, N_HEADS, HIDDEN)            # [L, H, 32]

    ff1_w = jnp.stack([lyr["ff1_w"] for lyr in layers])                   # [L, 32, 64]
    ff2_w = jnp.stack([lyr["ff2_w"] for lyr in layers])                   # [L, 64, 32]

    def pad_lane(v):
        return jnp.zeros((LANE,), f32).at[:v.shape[0]].set(v)

    # All tiny per-layer vectors packed into one (8,128) tile per layer.
    lvec = jnp.stack([jnp.stack([
        pad_lane(lyr["v_b"] @ lyr["ao_w"] + lyr["ao_b"]),                 # ROW_ATTN_BIAS
        pad_lane(lyr["ao_ln_g"]), pad_lane(lyr["ao_ln_b"]),
        pad_lane(lyr["ff1_b"]), pad_lane(lyr["ff2_b"]),
        pad_lane(lyr["ff_ln_g"]), pad_lane(lyr["ff_ln_b"]),
        jnp.zeros((LANE,), f32),
    ]) for lyr in layers])                                                # [L, 8, 128]

    gvec = jnp.stack([
        pad_lane(params["emb_ln_g"]), pad_lane(params["emb_ln_b"]),
        pad_lane(params["pool_b"]), pad_lane(params["cls_b"]),
    ])                                                                    # [4, 128]

    # Position + (all-zero) token-type embeddings, tiled over the folded batch: [BS, 32].
    pos_type = jnp.tile(params["pos_emb"][:S] + params["type_emb"][0][None, :], (B, 1))

    # Classifier padded to a lane-dense 128-wide output slab.
    cls_w_pad = jnp.zeros((HIDDEN, LANE), f32).at[:, :N_CLASSES].set(params["cls_w"])

    vmem = pl.BlockSpec(memory_space=pltpu.MemorySpace.VMEM)
    kernel = functools.partial(fused_bert_kernel, batch=B, seq=S)
    logits_pad = pl.pallas_call(
        kernel,
        out_shape=jax.ShapeDtypeStruct((B, LANE), f32),
        in_specs=[vmem] * 12,
        out_specs=vmem,
    )(ids, add_mask, params["word_emb"], pos_type, attw, kb,
      ff1_w, ff2_w, lvec, params["pool_w"], cls_w_pad, gvec)

    return logits_pad[:, :N_CLASSES]


# ----------------------------------- main -----------------------------------
if __name__ == "__main__":
    key = jax.random.PRNGKey(0)
    pkey, ikey = jax.random.split(key)
    params = init_params(pkey)

    B, S = 2, 8
    input_ids = jax.random.randint(ikey, (B, S), 0, VOCAB, dtype=jnp.int32)
    attention_mask = jnp.array([[1, 1, 1, 1, 1, 1, 1, 1],
                                [1, 1, 1, 1, 1, 1, 0, 0]], dtype=jnp.int32)

    fwd = jax.jit(functools.partial(sentiment_classifier_forward, params))
    logits = fwd(input_ids, attention_mask)
    jax.block_until_ready(logits)
    assert logits.shape == (B, N_CLASSES) and logits.dtype == jnp.float32
    print("KERNEL_OK")
</pallas_src>

<mosaic_0001>
module attributes {stable_mosaic.version = 11 : i64} {
  func.func @fused_bert_kernel(%arg0: memref<16x1xi32, #tpu.memory_space<vmem>>, %arg1: memref<16x16xf32, #tpu.memory_space<vmem>>, %arg2: memref<100x32xf32, #tpu.memory_space<vmem>>, %arg3: memref<16x32xf32, #tpu.memory_space<vmem>>, %arg4: memref<16x32x32xf32, #tpu.memory_space<vmem>>, %arg5: memref<2x4x32xf32, #tpu.memory_space<vmem>>, %arg6: memref<2x32x64xf32, #tpu.memory_space<vmem>>, %arg7: memref<2x64x32xf32, #tpu.memory_space<vmem>>, %arg8: memref<2x8x128xf32, #tpu.memory_space<vmem>>, %arg9: memref<32x32xf32, #tpu.memory_space<vmem>>, %arg10: memref<32x128xf32, #tpu.memory_space<vmem>>, %arg11: memref<4x128xf32, #tpu.memory_space<vmem>>, %arg12: memref<2x128xf32, #tpu.memory_space<vmem>>) attributes {dimension_semantics = [], scalar_prefetch = 0 : i64, scratch_operands = 0 : i64, tpu.core_type = #tpu.core_type<tc>} {
    %c0 = arith.constant 0 : index
    %c0_0 = arith.constant 0 : index
    %0 = vector.load %arg0[%c0, %c0_0] : memref<16x1xi32, #tpu.memory_space<vmem>>, vector<16x1xi32>
    %1 = tpu.iota {dimensions = array<i32: 1>} : vector<16x100xi32>
    %2 = vector.broadcast %0 : vector<16x1xi32> to vector<16x100xi32>
    %3 = arith.cmpi eq, %1, %2 : vector<16x100xi32>
    %4 = arith.extui %3 : vector<16x100xi1> to vector<16x100xi32>
    %5 = arith.sitofp %4 : vector<16x100xi32> to vector<16x100xf32>
    %c0_1 = arith.constant 0 : index
    %c0_2 = arith.constant 0 : index
    %6 = vector.load %arg2[%c0_1, %c0_2] : memref<100x32xf32, #tpu.memory_space<vmem>>, vector<100x32xf32>
    %cst = arith.constant dense<0.000000e+00> : vector<16x32xf32>
    %7 = tpu.matmul %5, %6, %cst {dimension_numbers = #tpu.dot_dimension_numbers<[1], [0], [0], [1], [0, 0, 1, 1], [], []>} : vector<16x100xf32>, vector<100x32xf32>, vector<16x32xf32> -> vector<16x32xf32>
    %c0_3 = arith.constant 0 : index
    %c0_4 = arith.constant 0 : index
    %8 = vector.load %arg3[%c0_3, %c0_4] : memref<16x32xf32, #tpu.memory_space<vmem>>, vector<16x32xf32>
    %9 = arith.addf %7, %8 : vector<16x32xf32>
    %c0_5 = arith.constant 0 : index
    %c0_6 = arith.constant 0 : index
    %10 = vector.load %arg11[%c0_5, %c0_6] : memref<4x128xf32, #tpu.memory_space<vmem>>, vector<4x128xf32>
    %11 = vector.extract_strided_slice %10 {offsets = [0, 0], sizes = [1, 32], strides = [1, 1]} : vector<4x128xf32> to vector<1x32xf32>
    %12 = vector.extract_strided_slice %10 {offsets = [1, 0], sizes = [1, 32], strides = [1, 1]} : vector<4x128xf32> to vector<1x32xf32>
    %cst_7 = arith.constant dense<0.000000e+00> : vector<16xf32>
    %13 = vector.multi_reduction <add>, %9, %cst_7 [1] : vector<16x32xf32> to vector<16xf32>
    %14 = vector.shape_cast %13 : vector<16xf32> to vector<16x1xf32>
    %cst_8 = arith.constant 3.200000e+01 : f32
    %15 = vector.broadcast %cst_8 : f32 to vector<16x1xf32>
    %16 = arith.divf %14, %15 : vector<16x1xf32>
    %17 = vector.broadcast %16 : vector<16x1xf32> to vector<16x32xf32>
    %18 = arith.subf %9, %17 : vector<16x32xf32>
    %19 = arith.mulf %18, %18 : vector<16x32xf32>
    %cst_9 = arith.constant dense<0.000000e+00> : vector<16xf32>
    %20 = vector.multi_reduction <add>, %19, %cst_9 [1] : vector<16x32xf32> to vector<16xf32>
    %21 = vector.shape_cast %20 : vector<16xf32> to vector<16x1xf32>
    %cst_10 = arith.constant 3.200000e+01 : f32
    %22 = vector.broadcast %cst_10 : f32 to vector<16x1xf32>
    %23 = arith.divf %21, %22 : vector<16x1xf32>
    %24 = vector.broadcast %16 : vector<16x1xf32> to vector<16x32xf32>
    %25 = arith.subf %9, %24 : vector<16x32xf32>
    %cst_11 = arith.constant 9.99999996E-13 : f32
    %26 = vector.broadcast %cst_11 : f32 to vector<16x1xf32>
    %27 = arith.addf %23, %26 : vector<16x1xf32>
    %28 = math.rsqrt %27 : vector<16x1xf32>
    %29 = vector.broadcast %28 : vector<16x1xf32> to vector<16x32xf32>
    %30 = arith.mulf %25, %29 : vector<16x32xf32>
    %31 = vector.broadcast %11 : vector<1x32xf32> to vector<16x32xf32>
    %32 = arith.mulf %30, %31 : vector<16x32xf32>
    %33 = vector.broadcast %12 : vector<1x32xf32> to vector<16x32xf32>
    %34 = arith.addf %32, %33 : vector<16x32xf32>
    %c0_12 = arith.constant 0 : index
    %c0_13 = arith.constant 0 : index
    %35 = vector.load %arg1[%c0_12, %c0_13] : memref<16x16xf32, #tpu.memory_space<vmem>>, vector<16x16xf32>
    %c0_14 = arith.constant 0 : index
    %c0_15 = arith.constant 0 : index
    %c0_16 = arith.constant 0 : index
    %36 = vector.load %arg8[%c0_14, %c0_15, %c0_16] : memref<2x8x128xf32, #tpu.memory_space<vmem>>, vector<1x8x128xf32>
    %37 = vector.shape_cast %36 : vector<1x8x128xf32> to vector<8x128xf32>
    %c0_17 = arith.constant 0 : index
    %c0_18 = arith.constant 0 : index
    %c0_19 = arith.constant 0 : index
    %38 = vector.load %arg5[%c0_17, %c0_18, %c0_19] : memref<2x4x32xf32, #tpu.memory_space<vmem>>, vector<1x4x32xf32>
    %39 = vector.shape_cast %38 : vector<1x4x32xf32> to vector<4x32xf32>
    %cst_20 = arith.constant dense<0.000000e+00> : vector<4x16xf32>
    %40 = tpu.matmul %39, %34, %cst_20 {dimension_numbers = #tpu.dot_dimension_numbers<[1], [1], [0], [0], [0, 0, 1, 0], [], []>} : vector<4x32xf32>, vector<16x32xf32>, vector<4x16xf32> -> vector<4x16xf32>
    %cst_21 = arith.constant 0.000000e+00 : f32
    %41 = vector.broadcast %cst_21 : f32 to vector<16x32xf32>
    %c0_22 = arith.constant 0 : index
    %c0_23 = arith.constant 0 : index
    %c0_24 = arith.constant 0 : index
    %42 = vector.load %arg4[%c0_22, %c0_23, %c0_24] : memref<16x32x32xf32, #tpu.memory_space<vmem>>, vector<1x32x32xf32>
    %43 = vector.shape_cast %42 : vector<1x32x32xf32> to vector<32x32xf32>
    %cst_25 = arith.constant dense<0.000000e+00> : vector<16x32xf32>
    %44 = tpu.matmul %34, %43, %cst_25 {dimension_numbers = #tpu.dot_dimension_numbers<[1], [0], [0], [1], [0, 0, 1, 1], [], []>} : vector<16x32xf32>, vector<32x32xf32>, vector<16x32xf32> -> vector<16x32xf32>
    %cst_26 = arith.constant dense<0.000000e+00> : vector<16x16xf32>
    %45 = tpu.matmul %44, %34, %cst_26 {dimension_numbers = #tpu.dot_dimension_numbers<[1], [1], [0], [0], [0, 0, 1, 0], [], []>} : vector<16x32xf32>, vector<16x32xf32>, vector<16x16xf32> -> vector<16x16xf32>
    %46 = vector.extract_strided_slice %40 {offsets = [0, 0], sizes = [1, 16], strides = [1, 1]} : vector<4x16xf32> to vector<1x16xf32>
    %47 = vector.broadcast %46 : vector<1x16xf32> to vector<16x16xf32>
    %48 = arith.addf %45, %47 : vector<16x16xf32>
    %49 = arith.addf %48, %35 : vector<16x16xf32>
    %cst_27 = arith.constant dense<0xFF800000> : vector<16xf32>
    %50 = vector.multi_reduction <maximumf>, %49, %cst_27 [1] : vector<16x16xf32> to vector<16xf32>
    %51 = vector.shape_cast %50 : vector<16xf32> to vector<16x1xf32>
    %52 = vector.broadcast %51 : vector<16x1xf32> to vector<16x16xf32>
    %53 = arith.subf %49, %52 : vector<16x16xf32>
    %54 = math.exp %53 : vector<16x16xf32>
    %cst_28 = arith.constant dense<0.000000e+00> : vector<16xf32>
    %55 = vector.multi_reduction <add>, %54, %cst_28 [1] : vector<16x16xf32> to vector<16xf32>
    %56 = vector.shape_cast %55 : vector<16xf32> to vector<16x1xf32>
    %57 = vector.broadcast %56 : vector<16x1xf32> to vector<16x16xf32>
    %58 = arith.divf %54, %57 : vector<16x16xf32>
    %c1 = arith.constant 1 : index
    %c0_29 = arith.constant 0 : index
    %c0_30 = arith.constant 0 : index
    %59 = vector.load %arg4[%c1, %c0_29, %c0_30] : memref<16x32x32xf32, #tpu.memory_space<vmem>>, vector<1x32x32xf32>
    %60 = vector.shape_cast %59 : vector<1x32x32xf32> to vector<32x32xf32>
    %cst_31 = arith.constant dense<0.000000e+00> : vector<16x32xf32>
    %61 = tpu.matmul %34, %60, %cst_31 {dimension_numbers = #tpu.dot_dimension_numbers<[1], [0], [0], [1], [0, 0, 1, 1], [], []>} : vector<16x32xf32>, vector<32x32xf32>, vector<16x32xf32> -> vector<16x32xf32>
    %cst_32 = arith.constant dense<0.000000e+00> : vector<16x32xf32>
    %62 = tpu.matmul %58, %61, %cst_32 {dimension_numbers = #tpu.dot_dimension_numbers<[1], [0], [0], [1], [0, 0, 1, 1], [], []>} : vector<16x16xf32>, vector<16x32xf32>, vector<16x32xf32> -> vector<16x32xf32>
    %63 = arith.addf %41, %62 : vector<16x32xf32>
    %c2 = arith.constant 2 : index
    %c0_33 = arith.constant 0 : index
    %c0_34 = arith.constant 0 : index
    %64 = vector.load %arg4[%c2, %c0_33, %c0_34] : memref<16x32x32xf32, #tpu.memory_space<vmem>>, vector<1x32x32xf32>
    %65 = vector.shape_cast %64 : vector<1x32x32xf32> to vector<32x32xf32>
    %cst_35 = arith.constant dense<0.000000e+00> : vector<16x32xf32>
    %66 = tpu.matmul %34, %65, %cst_35 {dimension_numbers = #tpu.dot_dimension_numbers<[1], [0], [0], [1], [0, 0, 1, 1], [], []>} : vector<16x32xf32>, vector<32x32xf32>, vector<16x32xf32> -> vector<16x32xf32>
    %cst_36 = arith.constant dense<0.000000e+00> : vector<16x16xf32>
    %67 = tpu.matmul %66, %34, %cst_36 {dimension_numbers = #tpu.dot_dimension_numbers<[1], [1], [0], [0], [0, 0, 1, 0], [], []>} : vector<16x32xf32>, vector<16x32xf32>, vector<16x16xf32> -> vector<16x16xf32>
    %68 = vector.extract_strided_slice %40 {offsets = [1, 0], sizes = [1, 16], strides = [1, 1]} : vector<4x16xf32> to vector<1x16xf32>
    %69 = vector.broadcast %68 : vector<1x16xf32> to vector<16x16xf32>
    %70 = arith.addf %67, %69 : vector<16x16xf32>
    %71 = arith.addf %70, %35 : vector<16x16xf32>
    %cst_37 = arith.constant dense<0xFF800000> : vector<16xf32>
    %72 = vector.multi_reduction <maximumf>, %71, %cst_37 [1] : vector<16x16xf32> to vector<16xf32>
    %73 = vector.shape_cast %72 : vector<16xf32> to vector<16x1xf32>
    %74 = vector.broadcast %73 : vector<16x1xf32> to vector<16x16xf32>
    %75 = arith.subf %71, %74 : vector<16x16xf32>
    %76 = math.exp %75 : vector<16x16xf32>
    %cst_38 = arith.constant dense<0.000000e+00> : vector<16xf32>
    %77 = vector.multi_reduction <add>, %76, %cst_38 [1] : vector<16x16xf32> to vector<16xf32>
    %78 = vector.shape_cast %77 : vector<16xf32> to vector<16x1xf32>
    %79 = vector.broadcast %78 : vector<16x1xf32> to vector<16x16xf32>
    %80 = arith.divf %76, %79 : vector<16x16xf32>
    %c3 = arith.constant 3 : index
    %c0_39 = arith.constant 0 : index
    %c0_40 = arith.constant 0 : index
    %81 = vector.load %arg4[%c3, %c0_39, %c0_40] : memref<16x32x32xf32, #tpu.memory_space<vmem>>, vector<1x32x32xf32>
    %82 = vector.shape_cast %81 : vector<1x32x32xf32> to vector<32x32xf32>
    %cst_41 = arith.constant dense<0.000000e+00> : vector<16x32xf32>
    %83 = tpu.matmul %34, %82, %cst_41 {dimension_numbers = #tpu.dot_dimension_numbers<[1], [0], [0], [1], [0, 0, 1, 1], [], []>} : vector<16x32xf32>, vector<32x32xf32>, vector<16x32xf32> -> vector<16x32xf32>
    %cst_42 = arith.constant dense<0.000000e+00> : vector<16x32xf32>
    %84 = tpu.matmul %80, %83, %cst_42 {dimension_numbers = #tpu.dot_dimension_numbers<[1], [0], [0], [1], [0, 0, 1, 1], [], []>} : vector<16x16xf32>, vector<16x32xf32>, vector<16x32xf32> -> vector<16x32xf32>
    %85 = arith.addf %63, %84 : vector<16x32xf32>
    %c4 = arith.constant 4 : index
    %c0_43 = arith.constant 0 : index
    %c0_44 = arith.constant 0 : index
    %86 = vector.load %arg4[%c4, %c0_43, %c0_44] : memref<16x32x32xf32, #tpu.memory_space<vmem>>, vector<1x32x32xf32>
    %87 = vector.shape_cast %86 : vector<1x32x32xf32> to vector<32x32xf32>
    %cst_45 = arith.constant dense<0.000000e+00> : vector<16x32xf32>
    %88 = tpu.matmul %34, %87, %cst_45 {dimension_numbers = #tpu.dot_dimension_numbers<[1], [0], [0], [1], [0, 0, 1, 1], [], []>} : vector<16x32xf32>, vector<32x32xf32>, vector<16x32xf32> -> vector<16x32xf32>
    %cst_46 = arith.constant dense<0.000000e+00> : vector<16x16xf32>
    %89 = tpu.matmul %88, %34, %cst_46 {dimension_numbers = #tpu.dot_dimension_numbers<[1], [1], [0], [0], [0, 0, 1, 0], [], []>} : vector<16x32xf32>, vector<16x32xf32>, vector<16x16xf32> -> vector<16x16xf32>
    %90 = vector.extract_strided_slice %40 {offsets = [2, 0], sizes = [1, 16], strides = [1, 1]} : vector<4x16xf32> to vector<1x16xf32>
    %91 = vector.broadcast %90 : vector<1x16xf32> to vector<16x16xf32>
    %92 = arith.addf %89, %91 : vector<16x16xf32>
    %93 = arith.addf %92, %35 : vector<16x16xf32>
    %cst_47 = arith.constant dense<0xFF800000> : vector<16xf32>
    %94 = vector.multi_reduction <maximumf>, %93, %cst_47 [1] : vector<16x16xf32> to vector<16xf32>
    %95 = vector.shape_cast %94 : vector<16xf32> to vector<16x1xf32>
    %96 = vector.broadcast %95 : vector<16x1xf32> to vector<16x16xf32>
    %97 = arith.subf %93, %96 : vector<16x16xf32>
    %98 = math.exp %97 : vector<16x16xf32>
    %cst_48 = arith.constant dense<0.000000e+00> : vector<16xf32>
    %99 = vector.multi_reduction <add>, %98, %cst_48 [1] : vector<16x16xf32> to vector<16xf32>
    %100 = vector.shape_cast %99 : vector<16xf32> to vector<16x1xf32>
    %101 = vector.broadcast %100 : vector<16x1xf32> to vector<16x16xf32>
    %102 = arith.divf %98, %101 : vector<16x16xf32>
    %c5 = arith.constant 5 : index
    %c0_49 = arith.constant 0 : index
    %c0_50 = arith.constant 0 : index
    %103 = vector.load %arg4[%c5, %c0_49, %c0_50] : memref<16x32x32xf32, #tpu.memory_space<vmem>>, vector<1x32x32xf32>
    %104 = vector.shape_cast %103 : vector<1x32x32xf32> to vector<32x32xf32>
    %cst_51 = arith.constant dense<0.000000e+00> : vector<16x32xf32>
    %105 = tpu.matmul %34, %104, %cst_51 {dimension_numbers = #tpu.dot_dimension_numbers<[1], [0], [0], [1], [0, 0, 1, 1], [], []>} : vector<16x32xf32>, vector<32x32xf32>, vector<16x32xf32> -> vector<16x32xf32>
    %cst_52 = arith.constant dense<0.000000e+00> : vector<16x32xf32>
    %106 = tpu.matmul %102, %105, %cst_52 {dimension_numbers = #tpu.dot_dimension_numbers<[1], [0], [0], [1], [0, 0, 1, 1], [], []>} : vector<16x16xf32>, vector<16x32xf32>, vector<16x32xf32> -> vector<16x32xf32>
    %107 = arith.addf %85, %106 : vector<16x32xf32>
    %c6 = arith.constant 6 : index
    %c0_53 = arith.constant 0 : index
    %c0_54 = arith.constant 0 : index
    %108 = vector.load %arg4[%c6, %c0_53, %c0_54] : memref<16x32x32xf32, #tpu.memory_space<vmem>>, vector<1x32x32xf32>
    %109 = vector.shape_cast %108 : vector<1x32x32xf32> to vector<32x32xf32>
    %cst_55 = arith.constant dense<0.000000e+00> : vector<16x32xf32>
    %110 = tpu.matmul %34, %109, %cst_55 {dimension_numbers = #tpu.dot_dimension_numbers<[1], [0], [0], [1], [0, 0, 1, 1], [], []>} : vector<16x32xf32>, vector<32x32xf32>, vector<16x32xf32> -> vector<16x32xf32>
    %cst_56 = arith.constant dense<0.000000e+00> : vector<16x16xf32>
    %111 = tpu.matmul %110, %34, %cst_56 {dimension_numbers = #tpu.dot_dimension_numbers<[1], [1], [0], [0], [0, 0, 1, 0], [], []>} : vector<16x32xf32>, vector<16x32xf32>, vector<16x16xf32> -> vector<16x16xf32>
    %112 = vector.extract_strided_slice %40 {offsets = [3, 0], sizes = [1, 16], strides = [1, 1]} : vector<4x16xf32> to vector<1x16xf32>
    %113 = vector.broadcast %112 : vector<1x16xf32> to vector<16x16xf32>
    %114 = arith.addf %111, %113 : vector<16x16xf32>
    %115 = arith.addf %114, %35 : vector<16x16xf32>
    %cst_57 = arith.constant dense<0xFF800000> : vector<16xf32>
    %116 = vector.multi_reduction <maximumf>, %115, %cst_57 [1] : vector<16x16xf32> to vector<16xf32>
    %117 = vector.shape_cast %116 : vector<16xf32> to vector<16x1xf32>
    %118 = vector.broadcast %117 : vector<16x1xf32> to vector<16x16xf32>
    %119 = arith.subf %115, %118 : vector<16x16xf32>
    %120 = math.exp %119 : vector<16x16xf32>
    %cst_58 = arith.constant dense<0.000000e+00> : vector<16xf32>
    %121 = vector.multi_reduction <add>, %120, %cst_58 [1] : vector<16x16xf32> to vector<16xf32>
    %122 = vector.shape_cast %121 : vector<16xf32> to vector<16x1xf32>
    %123 = vector.broadcast %122 : vector<16x1xf32> to vector<16x16xf32>
    %124 = arith.divf %120, %123 : vector<16x16xf32>
    %c7 = arith.constant 7 : index
    %c0_59 = arith.constant 0 : index
    %c0_60 = arith.constant 0 : index
    %125 = vector.load %arg4[%c7, %c0_59, %c0_60] : memref<16x32x32xf32, #tpu.memory_space<vmem>>, vector<1x32x32xf32>
    %126 = vector.shape_cast %125 : vector<1x32x32xf32> to vector<32x32xf32>
    %cst_61 = arith.constant dense<0.000000e+00> : vector<16x32xf32>
    %127 = tpu.matmul %34, %126, %cst_61 {dimension_numbers = #tpu.dot_dimension_numbers<[1], [0], [0], [1], [0, 0, 1, 1], [], []>} : vector<16x32xf32>, vector<32x32xf32>, vector<16x32xf32> -> vector<16x32xf32>
    %cst_62 = arith.constant dense<0.000000e+00> : vector<16x32xf32>
    %128 = tpu.matmul %124, %127, %cst_62 {dimension_numbers = #tpu.dot_dimension_numbers<[1], [0], [0], [1], [0, 0, 1, 1], [], []>} : vector<16x16xf32>, vector<16x32xf32>, vector<16x32xf32> -> vector<16x32xf32>
    %129 = arith.addf %107, %128 : vector<16x32xf32>
    %130 = vector.extract_strided_slice %37 {offsets = [0, 0], sizes = [1, 32], strides = [1, 1]} : vector<8x128xf32> to vector<1x32xf32>
    %131 = vector.broadcast %130 : vector<1x32xf32> to vector<16x32xf32>
    %132 = arith.addf %129, %131 : vector<16x32xf32>
    %133 = arith.addf %132, %34 : vector<16x32xf32>
    %134 = vector.extract_strided_slice %37 {offsets = [1, 0], sizes = [1, 32], strides = [1, 1]} : vector<8x128xf32> to vector<1x32xf32>
    %135 = vector.extract_strided_slice %37 {offsets = [2, 0], sizes = [1, 32], strides = [1, 1]} : vector<8x128xf32> to vector<1x32xf32>
    %cst_63 = arith.constant dense<0.000000e+00> : vector<16xf32>
    %136 = vector.multi_reduction <add>, %133, %cst_63 [1] : vector<16x32xf32> to vector<16xf32>
    %137 = vector.shape_cast %136 : vector<16xf32> to vector<16x1xf32>
    %cst_64 = arith.constant 3.200000e+01 : f32
    %138 = vector.broadcast %cst_64 : f32 to vector<16x1xf32>
    %139 = arith.divf %137, %138 : vector<16x1xf32>
    %140 = vector.broadcast %139 : vector<16x1xf32> to vector<16x32xf32>
    %141 = arith.subf %133, %140 : vector<16x32xf32>
    %142 = arith.mulf %141, %141 : vector<16x32xf32>
    %cst_65 = arith.constant dense<0.000000e+00> : vector<16xf32>
    %143 = vector.multi_reduction <add>, %142, %cst_65 [1] : vector<16x32xf32> to vector<16xf32>
    %144 = vector.shape_cast %143 : vector<16xf32> to vector<16x1xf32>
    %cst_66 = arith.constant 3.200000e+01 : f32
    %145 = vector.broadcast %cst_66 : f32 to vector<16x1xf32>
    %146 = arith.divf %144, %145 : vector<16x1xf32>
    %147 = vector.broadcast %139 : vector<16x1xf32> to vector<16x32xf32>
    %148 = arith.subf %133, %147 : vector<16x32xf32>
    %cst_67 = arith.constant 9.99999996E-13 : f32
    %149 = vector.broadcast %cst_67 : f32 to vector<16x1xf32>
    %150 = arith.addf %146, %149 : vector<16x1xf32>
    %151 = math.rsqrt %150 : vector<16x1xf32>
    %152 = vector.broadcast %151 : vector<16x1xf32> to vector<16x32xf32>
    %153 = arith.mulf %148, %152 : vector<16x32xf32>
    %154 = vector.broadcast %134 : vector<1x32xf32> to vector<16x32xf32>
    %155 = arith.mulf %153, %154 : vector<16x32xf32>
    %156 = vector.broadcast %135 : vector<1x32xf32> to vector<16x32xf32>
    %157 = arith.addf %155, %156 : vector<16x32xf32>
    %c0_68 = arith.constant 0 : index
    %c0_69 = arith.constant 0 : index
    %c0_70 = arith.constant 0 : index
    %158 = vector.load %arg6[%c0_68, %c0_69, %c0_70] : memref<2x32x64xf32, #tpu.memory_space<vmem>>, vector<1x32x64xf32>
    %159 = vector.shape_cast %158 : vector<1x32x64xf32> to vector<32x64xf32>
    %cst_71 = arith.constant dense<0.000000e+00> : vector<16x64xf32>
    %160 = tpu.matmul %157, %159, %cst_71 {dimension_numbers = #tpu.dot_dimension_numbers<[1], [0], [0], [1], [0, 0, 1, 1], [], []>} : vector<16x32xf32>, vector<32x64xf32>, vector<16x64xf32> -> vector<16x64xf32>
    %161 = vector.extract_strided_slice %37 {offsets = [3, 0], sizes = [1, 64], strides = [1, 1]} : vector<8x128xf32> to vector<1x64xf32>
    %162 = vector.broadcast %161 : vector<1x64xf32> to vector<16x64xf32>
    %163 = arith.addf %160, %162 : vector<16x64xf32>
    %cst_72 = arith.constant 5.000000e-01 : f32
    %164 = vector.broadcast %cst_72 : f32 to vector<16x64xf32>
    %165 = arith.mulf %164, %163 : vector<16x64xf32>
    %cst_73 = arith.constant 4.471500e-02 : f32
    %166 = vector.broadcast %cst_73 : f32 to vector<16x64xf32>
    %167 = arith.mulf %166, %163 : vector<16x64xf32>
    %168 = arith.mulf %167, %163 : vector<16x64xf32>
    %169 = arith.mulf %168, %163 : vector<16x64xf32>
    %170 = arith.addf %163, %169 : vector<16x64xf32>
    %cst_74 = arith.constant 0.797884583 : f32
    %171 = vector.broadcast %cst_74 : f32 to vector<16x64xf32>
    %172 = arith.mulf %171, %170 : vector<16x64xf32>
    %173 = math.tanh %172 : vector<16x64xf32>
    %cst_75 = arith.constant 1.000000e+00 : f32
    %174 = vector.broadcast %cst_75 : f32 to vector<16x64xf32>
    %175 = arith.addf %174, %173 : vector<16x64xf32>
    %176 = arith.mulf %165, %175 : vector<16x64xf32>
    %c0_76 = arith.constant 0 : index
    %c0_77 = arith.constant 0 : index
    %c0_78 = arith.constant 0 : index
    %177 = vector.load %arg7[%c0_76, %c0_77, %c0_78] : memref<2x64x32xf32, #tpu.memory_space<vmem>>, vector<1x64x32xf32>
    %178 = vector.shape_cast %177 : vector<1x64x32xf32> to vector<64x32xf32>
    %cst_79 = arith.constant dense<0.000000e+00> : vector<16x32xf32>
    %179 = tpu.matmul %176, %178, %cst_79 {dimension_numbers = #tpu.dot_dimension_numbers<[1], [0], [0], [1], [0, 0, 1, 1], [], []>} : vector<16x64xf32>, vector<64x32xf32>, vector<16x32xf32> -> vector<16x32xf32>
    %180 = vector.extract_strided_slice %37 {offsets = [4, 0], sizes = [1, 32], strides = [1, 1]} : vector<8x128xf32> to vector<1x32xf32>
    %181 = vector.broadcast %180 : vector<1x32xf32> to vector<16x32xf32>
    %182 = arith.addf %179, %181 : vector<16x32xf32>
    %183 = arith.addf %182, %157 : vector<16x32xf32>
    %184 = vector.extract_strided_slice %37 {offsets = [5, 0], sizes = [1, 32], strides = [1, 1]} : vector<8x128xf32> to vector<1x32xf32>
    %185 = vector.extract_strided_slice %37 {offsets = [6, 0], sizes = [1, 32], strides = [1, 1]} : vector<8x128xf32> to vector<1x32xf32>
    %cst_80 = arith.constant dense<0.000000e+00> : vector<16xf32>
    %186 = vector.multi_reduction <add>, %183, %cst_80 [1] : vector<16x32xf32> to vector<16xf32>
    %187 = vector.shape_cast %186 : vector<16xf32> to vector<16x1xf32>
    %cst_81 = arith.constant 3.200000e+01 : f32
    %188 = vector.broadcast %cst_81 : f32 to vector<16x1xf32>
    %189 = arith.divf %187, %188 : vector<16x1xf32>
    %190 = vector.broadcast %189 : vector<16x1xf32> to vector<16x32xf32>
    %191 = arith.subf %183, %190 : vector<16x32xf32>
    %192 = arith.mulf %191, %191 : vector<16x32xf32>
    %cst_82 = arith.constant dense<0.000000e+00> : vector<16xf32>
    %193 = vector.multi_reduction <add>, %192, %cst_82 [1] : vector<16x32xf32> to vector<16xf32>
    %194 = vector.shape_cast %193 : vector<16xf32> to vector<16x1xf32>
    %cst_83 = arith.constant 3.200000e+01 : f32
    %195 = vector.broadcast %cst_83 : f32 to vector<16x1xf32>
    %196 = arith.divf %194, %195 : vector<16x1xf32>
    %197 = vector.broadcast %189 : vector<16x1xf32> to vector<16x32xf32>
    %198 = arith.subf %183, %197 : vector<16x32xf32>
    %cst_84 = arith.constant 9.99999996E-13 : f32
    %199 = vector.broadcast %cst_84 : f32 to vector<16x1xf32>
    %200 = arith.addf %196, %199 : vector<16x1xf32>
    %201 = math.rsqrt %200 : vector<16x1xf32>
    %202 = vector.broadcast %201 : vector<16x1xf32> to vector<16x32xf32>
    %203 = arith.mulf %198, %202 : vector<16x32xf32>
    %204 = vector.broadcast %184 : vector<1x32xf32> to vector<16x32xf32>
    %205 = arith.mulf %203, %204 : vector<16x32xf32>
    %206 = vector.broadcast %185 : vector<1x32xf32> to vector<16x32xf32>
    %207 = arith.addf %205, %206 : vector<16x32xf32>
    %c1_85 = arith.constant 1 : index
    %c0_86 = arith.constant 0 : index
    %c0_87 = arith.constant 0 : index
    %208 = vector.load %arg8[%c1_85, %c0_86, %c0_87] : memref<2x8x128xf32, #tpu.memory_space<vmem>>, vector<1x8x128xf32>
    %209 = vector.shape_cast %208 : vector<1x8x128xf32> to vector<8x128xf32>
    %c1_88 = arith.constant 1 : index
    %c0_89 = arith.constant 0 : index
    %c0_90 = arith.constant 0 : index
    %210 = vector.load %arg5[%c1_88, %c0_89, %c0_90] : memref<2x4x32xf32, #tpu.memory_space<vmem>>, vector<1x4x32xf32>
    %211 = vector.shape_cast %210 : vector<1x4x32xf32> to vector<4x32xf32>
    %cst_91 = arith.constant dense<0.000000e+00> : vector<4x16xf32>
    %212 = tpu.matmul %211, %207, %cst_91 {dimension_numbers = #tpu.dot_dimension_numbers<[1], [1], [0], [0], [0, 0, 1, 0], [], []>} : vector<4x32xf32>, vector<16x32xf32>, vector<4x16xf32> -> vector<4x16xf32>
    %cst_92 = arith.constant 0.000000e+00 : f32
    %213 = vector.broadcast %cst_92 : f32 to vector<16x32xf32>
    %c8 = arith.constant 8 : index
    %c0_93 = arith.constant 0 : index
    %c0_94 = arith.constant 0 : index
    %214 = vector.load %arg4[%c8, %c0_93, %c0_94] : memref<16x32x32xf32, #tpu.memory_space<vmem>>, vector<1x32x32xf32>
    %215 = vector.shape_cast %214 : vector<1x32x32xf32> to vector<32x32xf32>
    %cst_95 = arith.constant dense<0.000000e+00> : vector<16x32xf32>
    %216 = tpu.matmul %207, %215, %cst_95 {dimension_numbers = #tpu.dot_dimension_numbers<[1], [0], [0], [1], [0, 0, 1, 1], [], []>} : vector<16x32xf32>, vector<32x32xf32>, vector<16x32xf32> -> vector<16x32xf32>
    %cst_96 = arith.constant dense<0.000000e+00> : vector<16x16xf32>
    %217 = tpu.matmul %216, %207, %cst_96 {dimension_numbers = #tpu.dot_dimension_numbers<[1], [1], [0], [0], [0, 0, 1, 0], [], []>} : vector<16x32xf32>, vector<16x32xf32>, vector<16x16xf32> -> vector<16x16xf32>
    %218 = vector.extract_strided_slice %212 {offsets = [0, 0], sizes = [1, 16], strides = [1, 1]} : vector<4x16xf32> to vector<1x16xf32>
    %219 = vector.broadcast %218 : vector<1x16xf32> to vector<16x16xf32>
    %220 = arith.addf %217, %219 : vector<16x16xf32>
    %221 = arith.addf %220, %35 : vector<16x16xf32>
    %cst_97 = arith.constant dense<0xFF800000> : vector<16xf32>
    %222 = vector.multi_reduction <maximumf>, %221, %cst_97 [1] : vector<16x16xf32> to vector<16xf32>
    %223 = vector.shape_cast %222 : vector<16xf32> to vector<16x1xf32>
    %224 = vector.broadcast %223 : vector<16x1xf32> to vector<16x16xf32>
    %225 = arith.subf %221, %224 : vector<16x16xf32>
    %226 = math.exp %225 : vector<16x16xf32>
    %cst_98 = arith.constant dense<0.000000e+00> : vector<16xf32>
    %227 = vector.multi_reduction <add>, %226, %cst_98 [1] : vector<16x16xf32> to vector<16xf32>
    %228 = vector.shape_cast %227 : vector<16xf32> to vector<16x1xf32>
    %229 = vector.broadcast %228 : vector<16x1xf32> to vector<16x16xf32>
    %230 = arith.divf %226, %229 : vector<16x16xf32>
    %c9 = arith.constant 9 : index
    %c0_99 = arith.constant 0 : index
    %c0_100 = arith.constant 0 : index
    %231 = vector.load %arg4[%c9, %c0_99, %c0_100] : memref<16x32x32xf32, #tpu.memory_space<vmem>>, vector<1x32x32xf32>
    %232 = vector.shape_cast %231 : vector<1x32x32xf32> to vector<32x32xf32>
    %cst_101 = arith.constant dense<0.000000e+00> : vector<16x32xf32>
    %233 = tpu.matmul %207, %232, %cst_101 {dimension_numbers = #tpu.dot_dimension_numbers<[1], [0], [0], [1], [0, 0, 1, 1], [], []>} : vector<16x32xf32>, vector<32x32xf32>, vector<16x32xf32> -> vector<16x32xf32>
    %cst_102 = arith.constant dense<0.000000e+00> : vector<16x32xf32>
    %234 = tpu.matmul %230, %233, %cst_102 {dimension_numbers = #tpu.dot_dimension_numbers<[1], [0], [0], [1], [0, 0, 1, 1], [], []>} : vector<16x16xf32>, vector<16x32xf32>, vector<16x32xf32> -> vector<16x32xf32>
    %235 = arith.addf %213, %234 : vector<16x32xf32>
    %c10 = arith.constant 10 : index
    %c0_103 = arith.constant 0 : index
    %c0_104 = arith.constant 0 : index
    %236 = vector.load %arg4[%c10, %c0_103, %c0_104] : memref<16x32x32xf32, #tpu.memory_space<vmem>>, vector<1x32x32xf32>
    %237 = vector.shape_cast %236 : vector<1x32x32xf32> to vector<32x32xf32>
    %cst_105 = arith.constant dense<0.000000e+00> : vector<16x32xf32>
    %238 = tpu.matmul %207, %237, %cst_105 {dimension_numbers = #tpu.dot_dimension_numbers<[1], [0], [0], [1], [0, 0, 1, 1], [], []>} : vector<16x32xf32>, vector<32x32xf32>, vector<16x32xf32> -> vector<16x32xf32>
    %cst_106 = arith.constant dense<0.000000e+00> : vector<16x16xf32>
    %239 = tpu.matmul %238, %207, %cst_106 {dimension_numbers = #tpu.dot_dimension_numbers<[1], [1], [0], [0], [0, 0, 1, 0], [], []>} : vector<16x32xf32>, vector<16x32xf32>, vector<16x16xf32> -> vector<16x16xf32>
    %240 = vector.extract_strided_slice %212 {offsets = [1, 0], sizes = [1, 16], strides = [1, 1]} : vector<4x16xf32> to vector<1x16xf32>
    %241 = vector.broadcast %240 : vector<1x16xf32> to vector<16x16xf32>
    %242 = arith.addf %239, %241 : vector<16x16xf32>
    %243 = arith.addf %242, %35 : vector<16x16xf32>
    %cst_107 = arith.constant dense<0xFF800000> : vector<16xf32>
    %244 = vector.multi_reduction <maximumf>, %243, %cst_107 [1] : vector<16x16xf32> to vector<16xf32>
    %245 = vector.shape_cast %244 : vector<16xf32> to vector<16x1xf32>
    %246 = vector.broadcast %245 : vector<16x1xf32> to vector<16x16xf32>
    %247 = arith.subf %243, %246 : vector<16x16xf32>
    %248 = math.exp %247 : vector<16x16xf32>
    %cst_108 = arith.constant dense<0.000000e+00> : vector<16xf32>
    %249 = vector.multi_reduction <add>, %248, %cst_108 [1] : vector<16x16xf32> to vector<16xf32>
    %250 = vector.shape_cast %249 : vector<16xf32> to vector<16x1xf32>
    %251 = vector.broadcast %250 : vector<16x1xf32> to vector<16x16xf32>
    %252 = arith.divf %248, %251 : vector<16x16xf32>
    %c11 = arith.constant 11 : index
    %c0_109 = arith.constant 0 : index
    %c0_110 = arith.constant 0 : index
    %253 = vector.load %arg4[%c11, %c0_109, %c0_110] : memref<16x32x32xf32, #tpu.memory_space<vmem>>, vector<1x32x32xf32>
    %254 = vector.shape_cast %253 : vector<1x32x32xf32> to vector<32x32xf32>
    %cst_111 = arith.constant dense<0.000000e+00> : vector<16x32xf32>
    %255 = tpu.matmul %207, %254, %cst_111 {dimension_numbers = #tpu.dot_dimension_numbers<[1], [0], [0], [1], [0, 0, 1, 1], [], []>} : vector<16x32xf32>, vector<32x32xf32>, vector<16x32xf32> -> vector<16x32xf32>
    %cst_112 = arith.constant dense<0.000000e+00> : vector<16x32xf32>
    %256 = tpu.matmul %252, %255, %cst_112 {dimension_numbers = #tpu.dot_dimension_numbers<[1], [0], [0], [1], [0, 0, 1, 1], [], []>} : vector<16x16xf32>, vector<16x32xf32>, vector<16x32xf32> -> vector<16x32xf32>
    %257 = arith.addf %235, %256 : vector<16x32xf32>
    %c12 = arith.constant 12 : index
    %c0_113 = arith.constant 0 : index
    %c0_114 = arith.constant 0 : index
    %258 = vector.load %arg4[%c12, %c0_113, %c0_114] : memref<16x32x32xf32, #tpu.memory_space<vmem>>, vector<1x32x32xf32>
    %259 = vector.shape_cast %258 : vector<1x32x32xf32> to vector<32x32xf32>
    %cst_115 = arith.constant dense<0.000000e+00> : vector<16x32xf32>
    %260 = tpu.matmul %207, %259, %cst_115 {dimension_numbers = #tpu.dot_dimension_numbers<[1], [0], [0], [1], [0, 0, 1, 1], [], []>} : vector<16x32xf32>, vector<32x32xf32>, vector<16x32xf32> -> vector<16x32xf32>
    %cst_116 = arith.constant dense<0.000000e+00> : vector<16x16xf32>
    %261 = tpu.matmul %260, %207, %cst_116 {dimension_numbers = #tpu.dot_dimension_numbers<[1], [1], [0], [0], [0, 0, 1, 0], [], []>} : vector<16x32xf32>, vector<16x32xf32>, vector<16x16xf32> -> vector<16x16xf32>
    %262 = vector.extract_strided_slice %212 {offsets = [2, 0], sizes = [1, 16], strides = [1, 1]} : vector<4x16xf32> to vector<1x16xf32>
    %263 = vector.broadcast %262 : vector<1x16xf32> to vector<16x16xf32>
    %264 = arith.addf %261, %263 : vector<16x16xf32>
    %265 = arith.addf %264, %35 : vector<16x16xf32>
    %cst_117 = arith.constant dense<0xFF800000> : vector<16xf32>
    %266 = vector.multi_reduction <maximumf>, %265, %cst_117 [1] : vector<16x16xf32> to vector<16xf32>
    %267 = vector.shape_cast %266 : vector<16xf32> to vector<16x1xf32>
    %268 = vector.broadcast %267 : vector<16x1xf32> to vector<16x16xf32>
    %269 = arith.subf %265, %268 : vector<16x16xf32>
    %270 = math.exp %269 : vector<16x16xf32>
    %cst_118 = arith.constant dense<0.000000e+00> : vector<16xf32>
    %271 = vector.multi_reduction <add>, %270, %cst_118 [1] : vector<16x16xf32> to vector<16xf32>
    %272 = vector.shape_cast %271 : vector<16xf32> to vector<16x1xf32>
    %273 = vector.broadcast %272 : vector<16x1xf32> to vector<16x16xf32>
    %274 = arith.divf %270, %273 : vector<16x16xf32>
    %c13 = arith.constant 13 : index
    %c0_119 = arith.constant 0 : index
    %c0_120 = arith.constant 0 : index
    %275 = vector.load %arg4[%c13, %c0_119, %c0_120] : memref<16x32x32xf32, #tpu.memory_space<vmem>>, vector<1x32x32xf32>
    %276 = vector.shape_cast %275 : vector<1x32x32xf32> to vector<32x32xf32>
    %cst_121 = arith.constant dense<0.000000e+00> : vector<16x32xf32>
    %277 = tpu.matmul %207, %276, %cst_121 {dimension_numbers = #tpu.dot_dimension_numbers<[1], [0], [0], [1], [0, 0, 1, 1], [], []>} : vector<16x32xf32>, vector<32x32xf32>, vector<16x32xf32> -> vector<16x32xf32>
    %cst_122 = arith.constant dense<0.000000e+00> : vector<16x32xf32>
    %278 = tpu.matmul %274, %277, %cst_122 {dimension_numbers = #tpu.dot_dimension_numbers<[1], [0], [0], [1], [0, 0, 1, 1], [], []>} : vector<16x16xf32>, vector<16x32xf32>, vector<16x32xf32> -> vector<16x32xf32>
    %279 = arith.addf %257, %278 : vector<16x32xf32>
    %c14 = arith.constant 14 : index
    %c0_123 = arith.constant 0 : index
    %c0_124 = arith.constant 0 : index
    %280 = vector.load %arg4[%c14, %c0_123, %c0_124] : memref<16x32x32xf32, #tpu.memory_space<vmem>>, vector<1x32x32xf32>
    %281 = vector.shape_cast %280 : vector<1x32x32xf32> to vector<32x32xf32>
    %cst_125 = arith.constant dense<0.000000e+00> : vector<16x32xf32>
    %282 = tpu.matmul %207, %281, %cst_125 {dimension_numbers = #tpu.dot_dimension_numbers<[1], [0], [0], [1], [0, 0, 1, 1], [], []>} : vector<16x32xf32>, vector<32x32xf32>, vector<16x32xf32> -> vector<16x32xf32>
    %cst_126 = arith.constant dense<0.000000e+00> : vector<16x16xf32>
    %283 = tpu.matmul %282, %207, %cst_126 {dimension_numbers = #tpu.dot_dimension_numbers<[1], [1], [0], [0], [0, 0, 1, 0], [], []>} : vector<16x32xf32>, vector<16x32xf32>, vector<16x16xf32> -> vector<16x16xf32>
    %284 = vector.extract_strided_slice %212 {offsets = [3, 0], sizes = [1, 16], strides = [1, 1]} : vector<4x16xf32> to vector<1x16xf32>
    %285 = vector.broadcast %284 : vector<1x16xf32> to vector<16x16xf32>
    %286 = arith.addf %283, %285 : vector<16x16xf32>
    %287 = arith.addf %286, %35 : vector<16x16xf32>
    %cst_127 = arith.constant dense<0xFF800000> : vector<16xf32>
    %288 = vector.multi_reduction <maximumf>, %287, %cst_127 [1] : vector<16x16xf32> to vector<16xf32>
    %289 = vector.shape_cast %288 : vector<16xf32> to vector<16x1xf32>
    %290 = vector.broadcast %289 : vector<16x1xf32> to vector<16x16xf32>
    %291 = arith.subf %287, %290 : vector<16x16xf32>
    %292 = math.exp %291 : vector<16x16xf32>
    %cst_128 = arith.constant dense<0.000000e+00> : vector<16xf32>
    %293 = vector.multi_reduction <add>, %292, %cst_128 [1] : vector<16x16xf32> to vector<16xf32>
    %294 = vector.shape_cast %293 : vector<16xf32> to vector<16x1xf32>
    %295 = vector.broadcast %294 : vector<16x1xf32> to vector<16x16xf32>
    %296 = arith.divf %292, %295 : vector<16x16xf32>
    %c15 = arith.constant 15 : index
    %c0_129 = arith.constant 0 : index
    %c0_130 = arith.constant 0 : index
    %297 = vector.load %arg4[%c15, %c0_129, %c0_130] : memref<16x32x32xf32, #tpu.memory_space<vmem>>, vector<1x32x32xf32>
    %298 = vector.shape_cast %297 : vector<1x32x32xf32> to vector<32x32xf32>
    %cst_131 = arith.constant dense<0.000000e+00> : vector<16x32xf32>
    %299 = tpu.matmul %207, %298, %cst_131 {dimension_numbers = #tpu.dot_dimension_numbers<[1], [0], [0], [1], [0, 0, 1, 1], [], []>} : vector<16x32xf32>, vector<32x32xf32>, vector<16x32xf32> -> vector<16x32xf32>
    %cst_132 = arith.constant dense<0.000000e+00> : vector<16x32xf32>
    %300 = tpu.matmul %296, %299, %cst_132 {dimension_numbers = #tpu.dot_dimension_numbers<[1], [0], [0], [1], [0, 0, 1, 1], [], []>} : vector<16x16xf32>, vector<16x32xf32>, vector<16x32xf32> -> vector<16x32xf32>
    %301 = arith.addf %279, %300 : vector<16x32xf32>
    %302 = vector.extract_strided_slice %209 {offsets = [0, 0], sizes = [1, 32], strides = [1, 1]} : vector<8x128xf32> to vector<1x32xf32>
    %303 = vector.broadcast %302 : vector<1x32xf32> to vector<16x32xf32>
    %304 = arith.addf %301, %303 : vector<16x32xf32>
    %305 = arith.addf %304, %207 : vector<16x32xf32>
    %306 = vector.extract_strided_slice %209 {offsets = [1, 0], sizes = [1, 32], strides = [1, 1]} : vector<8x128xf32> to vector<1x32xf32>
    %307 = vector.extract_strided_slice %209 {offsets = [2, 0], sizes = [1, 32], strides = [1, 1]} : vector<8x128xf32> to vector<1x32xf32>
    %cst_133 = arith.constant dense<0.000000e+00> : vector<16xf32>
    %308 = vector.multi_reduction <add>, %305, %cst_133 [1] : vector<16x32xf32> to vector<16xf32>
    %309 = vector.shape_cast %308 : vector<16xf32> to vector<16x1xf32>
    %cst_134 = arith.constant 3.200000e+01 : f32
    %310 = vector.broadcast %cst_134 : f32 to vector<16x1xf32>
    %311 = arith.divf %309, %310 : vector<16x1xf32>
    %312 = vector.broadcast %311 : vector<16x1xf32> to vector<16x32xf32>
    %313 = arith.subf %305, %312 : vector<16x32xf32>
    %314 = arith.mulf %313, %313 : vector<16x32xf32>
    %cst_135 = arith.constant dense<0.000000e+00> : vector<16xf32>
    %315 = vector.multi_reduction <add>, %314, %cst_135 [1] : vector<16x32xf32> to vector<16xf32>
    %316 = vector.shape_cast %315 : vector<16xf32> to vector<16x1xf32>
    %cst_136 = arith.constant 3.200000e+01 : f32
    %317 = vector.broadcast %cst_136 : f32 to vector<16x1xf32>
    %318 = arith.divf %316, %317 : vector<16x1xf32>
    %319 = vector.broadcast %311 : vector<16x1xf32> to vector<16x32xf32>
    %320 = arith.subf %305, %319 : vector<16x32xf32>
    %cst_137 = arith.constant 9.99999996E-13 : f32
    %321 = vector.broadcast %cst_137 : f32 to vector<16x1xf32>
    %322 = arith.addf %318, %321 : vector<16x1xf32>
    %323 = math.rsqrt %322 : vector<16x1xf32>
    %324 = vector.broadcast %323 : vector<16x1xf32> to vector<16x32xf32>
    %325 = arith.mulf %320, %324 : vector<16x32xf32>
    %326 = vector.broadcast %306 : vector<1x32xf32> to vector<16x32xf32>
    %327 = arith.mulf %325, %326 : vector<16x32xf32>
    %328 = vector.broadcast %307 : vector<1x32xf32> to vector<16x32xf32>
    %329 = arith.addf %327, %328 : vector<16x32xf32>
    %c1_138 = arith.constant 1 : index
    %c0_139 = arith.constant 0 : index
    %c0_140 = arith.constant 0 : index
    %330 = vector.load %arg6[%c1_138, %c0_139, %c0_140] : memref<2x32x64xf32, #tpu.memory_space<vmem>>, vector<1x32x64xf32>
    %331 = vector.shape_cast %330 : vector<1x32x64xf32> to vector<32x64xf32>
    %cst_141 = arith.constant dense<0.000000e+00> : vector<16x64xf32>
    %332 = tpu.matmul %329, %331, %cst_141 {dimension_numbers = #tpu.dot_dimension_numbers<[1], [0], [0], [1], [0, 0, 1, 1], [], []>} : vector<16x32xf32>, vector<32x64xf32>, vector<16x64xf32> -> vector<16x64xf32>
    %333 = vector.extract_strided_slice %209 {offsets = [3, 0], sizes = [1, 64], strides = [1, 1]} : vector<8x128xf32> to vector<1x64xf32>
    %334 = vector.broadcast %333 : vector<1x64xf32> to vector<16x64xf32>
    %335 = arith.addf %332, %334 : vector<16x64xf32>
    %cst_142 = arith.constant 5.000000e-01 : f32
    %336 = vector.broadcast %cst_142 : f32 to vector<16x64xf32>
    %337 = arith.mulf %336, %335 : vector<16x64xf32>
    %cst_143 = arith.constant 4.471500e-02 : f32
    %338 = vector.broadcast %cst_143 : f32 to vector<16x64xf32>
    %339 = arith.mulf %338, %335 : vector<16x64xf32>
    %340 = arith.mulf %339, %335 : vector<16x64xf32>
    %341 = arith.mulf %340, %335 : vector<16x64xf32>
    %342 = arith.addf %335, %341 : vector<16x64xf32>
    %cst_144 = arith.constant 0.797884583 : f32
    %343 = vector.broadcast %cst_144 : f32 to vector<16x64xf32>
    %344 = arith.mulf %343, %342 : vector<16x64xf32>
    %345 = math.tanh %344 : vector<16x64xf32>
    %cst_145 = arith.constant 1.000000e+00 : f32
    %346 = vector.broadcast %cst_145 : f32 to vector<16x64xf32>
    %347 = arith.addf %346, %345 : vector<16x64xf32>
    %348 = arith.mulf %337, %347 : vector<16x64xf32>
    %c1_146 = arith.constant 1 : index
    %c0_147 = arith.constant 0 : index
    %c0_148 = arith.constant 0 : index
    %349 = vector.load %arg7[%c1_146, %c0_147, %c0_148] : memref<2x64x32xf32, #tpu.memory_space<vmem>>, vector<1x64x32xf32>
    %350 = vector.shape_cast %349 : vector<1x64x32xf32> to vector<64x32xf32>
    %cst_149 = arith.constant dense<0.000000e+00> : vector<16x32xf32>
    %351 = tpu.matmul %348, %350, %cst_149 {dimension_numbers = #tpu.dot_dimension_numbers<[1], [0], [0], [1], [0, 0, 1, 1], [], []>} : vector<16x64xf32>, vector<64x32xf32>, vector<16x32xf32> -> vector<16x32xf32>
    %352 = vector.extract_strided_slice %209 {offsets = [4, 0], sizes = [1, 32], strides = [1, 1]} : vector<8x128xf32> to vector<1x32xf32>
    %353 = vector.broadcast %352 : vector<1x32xf32> to vector<16x32xf32>
    %354 = arith.addf %351, %353 : vector<16x32xf32>
    %355 = arith.addf %354, %329 : vector<16x32xf32>
    %356 = vector.extract_strided_slice %209 {offsets = [5, 0], sizes = [1, 32], strides = [1, 1]} : vector<8x128xf32> to vector<1x32xf32>
    %357 = vector.extract_strided_slice %209 {offsets = [6, 0], sizes = [1, 32], strides = [1, 1]} : vector<8x128xf32> to vector<1x32xf32>
    %cst_150 = arith.constant dense<0.000000e+00> : vector<16xf32>
    %358 = vector.multi_reduction <add>, %355, %cst_150 [1] : vector<16x32xf32> to vector<16xf32>
    %359 = vector.shape_cast %358 : vector<16xf32> to vector<16x1xf32>
    %cst_151 = arith.constant 3.200000e+01 : f32
    %360 = vector.broadcast %cst_151 : f32 to vector<16x1xf32>
    %361 = arith.divf %359, %360 : vector<16x1xf32>
    %362 = vector.broadcast %361 : vector<16x1xf32> to vector<16x32xf32>
    %363 = arith.subf %355, %362 : vector<16x32xf32>
    %364 = arith.mulf %363, %363 : vector<16x32xf32>
    %cst_152 = arith.constant dense<0.000000e+00> : vector<16xf32>
    %365 = vector.multi_reduction <add>, %364, %cst_152 [1] : vector<16x32xf32> to vector<16xf32>
    %366 = vector.shape_cast %365 : vector<16xf32> to vector<16x1xf32>
    %cst_153 = arith.constant 3.200000e+01 : f32
    %367 = vector.broadcast %cst_153 : f32 to vector<16x1xf32>
    %368 = arith.divf %366, %367 : vector<16x1xf32>
    %369 = vector.broadcast %361 : vector<16x1xf32> to vector<16x32xf32>
    %370 = arith.subf %355, %369 : vector<16x32xf32>
    %cst_154 = arith.constant 9.99999996E-13 : f32
    %371 = vector.broadcast %cst_154 : f32 to vector<16x1xf32>
    %372 = arith.addf %368, %371 : vector<16x1xf32>
    %373 = math.rsqrt %372 : vector<16x1xf32>
    %374 = vector.broadcast %373 : vector<16x1xf32> to vector<16x32xf32>
    %375 = arith.mulf %370, %374 : vector<16x32xf32>
    %376 = vector.broadcast %356 : vector<1x32xf32> to vector<16x32xf32>
    %377 = arith.mulf %375, %376 : vector<16x32xf32>
    %378 = vector.broadcast %357 : vector<1x32xf32> to vector<16x32xf32>
    %379 = arith.addf %377, %378 : vector<16x32xf32>
    %380 = tpu.iota {dimensions = array<i32: 1>} : vector<2x16xi32>
    %381 = tpu.iota {dimensions = array<i32: 0>} : vector<2x16xi32>
    %c8_i32 = arith.constant 8 : i32
    %382 = vector.broadcast %c8_i32 : i32 to vector<2x16xi32>
    %383 = arith.muli %381, %382 : vector<2x16xi32>
    %384 = arith.cmpi eq, %380, %383 : vector<2x16xi32>
    %385 = arith.extui %384 : vector<2x16xi1> to vector<2x16xi32>
    %386 = arith.sitofp %385 : vector<2x16xi32> to vector<2x16xf32>
    %cst_155 = arith.constant dense<0.000000e+00> : vector<2x32xf32>
    %387 = tpu.matmul %386, %379, %cst_155 {dimension_numbers = #tpu.dot_dimension_numbers<[1], [0], [0], [1], [0, 0, 1, 1], [], []>} : vector<2x16xf32>, vector<16x32xf32>, vector<2x32xf32> -> vector<2x32xf32>
    %c0_156 = arith.constant 0 : index
    %c0_157 = arith.constant 0 : index
    %388 = vector.load %arg9[%c0_156, %c0_157] : memref<32x32xf32, #tpu.memory_space<vmem>>, vector<32x32xf32>
    %cst_158 = arith.constant dense<0.000000e+00> : vector<2x32xf32>
    %389 = tpu.matmul %387, %388, %cst_158 {dimension_numbers = #tpu.dot_dimension_numbers<[1], [0], [0], [1], [0, 0, 1, 1], [], []>} : vector<2x32xf32>, vector<32x32xf32>, vector<2x32xf32> -> vector<2x32xf32>
    %390 = vector.extract_strided_slice %10 {offsets = [2, 0], sizes = [1, 32], strides = [1, 1]} : vector<4x128xf32> to vector<1x32xf32>
    %391 = vector.broadcast %390 : vector<1x32xf32> to vector<2x32xf32>
    %392 = arith.addf %389, %391 : vector<2x32xf32>
    %393 = math.tanh %392 : vector<2x32xf32>
    %c0_159 = arith.constant 0 : index
    %c0_160 = arith.constant 0 : index
    %394 = vector.load %arg10[%c0_159, %c0_160] : memref<32x128xf32, #tpu.memory_space<vmem>>, vector<32x128xf32>
    %cst_161 = arith.constant dense<0.000000e+00> : vector<2x128xf32>
    %395 = tpu.matmul %393, %394, %cst_161 {dimension_numbers = #tpu.dot_dimension_numbers<[1], [0], [0], [1], [0, 0, 1, 1], [], []>} : vector<2x32xf32>, vector<32x128xf32>, vector<2x128xf32> -> vector<2x128xf32>
    %396 = vector.extract_strided_slice %10 {offsets = [3, 0], sizes = [1, 128], strides = [1, 1]} : vector<4x128xf32> to vector<1x128xf32>
    %397 = vector.broadcast %396 : vector<1x128xf32> to vector<2x128xf32>
    %398 = arith.addf %395, %397 : vector<2x128xf32>
    %c0_162 = arith.constant 0 : index
    %c0_163 = arith.constant 0 : index
    %399 = vector.load %arg12[%c0_162, %c0_163] : memref<2x128xf32, #tpu.memory_space<vmem>>, vector<2x128xf32>
    tpu.vector_store %arg12[%c0_162, %c0_163], %398 {strides = array<i32>} : memref<2x128xf32, #tpu.memory_space<vmem>>, vector<2x128xf32>,
    return
  }
}

</mosaic_0001>

<bundles_post_ra>
// kernel: eq.8
= control target key start
LH: loop header
LB: loop body
LE: loop exit
PB: predicated region body
PF: predicated region fallthrough
CT: control target
= control target key end

     0   :  { %vm7_vm0 = vcmask 64512   ;;  %vm13_vm1 = vcmask 130112   ;;  %s39_s0 = inlined_call_operand.vmem [shape: s32[2,8], index: 0, kind: input, shape index: {}]   ;;  %s40_s1 = inlined_call_operand.vmem [shape: s32[16], index: 1, kind: output, shape index: {}]  }
   0x1   :  { %v4_v0 = vld [vmem:[%s39_s0] sm:$0x3]  ;;  %s22_s0 = smov 8  }
   0x2   :  { %5 = vst [vmem:[#allocation1] sm:$0x3] %v4_v0 }
   0x9   :  { %v10_v1 = vld [vmem:[#allocation1 + $0x1] sm:$0x1]   ;;  %v6_v2 = vld [vmem:[#allocation1] sm:$0x1]  }
   0xa   :  { %11 = vrot.lane.b32.xlu0 %v10_v1, %s22_s0  ;;  %8 = vst.msk [vmem:[#allocation0] sm:$0x1] %vm7_vm0, %v6_v2  }
  0x7c   :  { %v12_v3 = vpop.permute.xlu0 %11  }
  0x7d   :  { %14 = vst.msk [vmem:[#allocation0] sm:$0x1] %vm13_vm1, %v12_v3  }
  0x84   :  { %v17_v4 = vld [vmem:[#allocation0] sm:$0x1] }
  0x85   :  { %20 = vst [vmem:[%s40_s1] sm:$0x1] %v17_v4 }

// kernel: sentiment_classifier_forward.1
= control target key start
LH: loop header
LB: loop body
LE: loop exit
PB: predicated region body
PF: predicated region fallthrough
CT: control target
= control target key end

     0   :  { %17 = vsyncpa [#allocation3], 0  ;;  %s3022_s0 = inlined_call_operand.vmem [shape: s32[16,1], index: 0, kind: input, shape index: {}]   ;;  %s3023_s1 = inlined_call_operand.vmem [shape: f32[16,16], index: 1, kind: input, shape index: {}]   ;;  %s3024_s2 = inlined_call_operand.hbm [shape: f32[100,32], index: 2, kind: input, shape index: {}]   ;;  %s3025_s3 = inlined_call_operand.vmem [shape: f32[16,32], index: 3, kind: input, shape index: {}]   ;;  %s3026_s4 = inlined_call_operand.hbm [shape: f32[16,32,32], index: 4, kind: input, shape index: {}]   ;;  %s3027_s5 = inlined_call_operand.vmem [shape: f32[2,4,32], index: 5, kind: input, shape index: {}]   ;;  %s3028_s6 = inlined_call_operand.hbm [shape: f32[2,32,64], index: 6, kind: input, shape index: {}]   ;;  %s3029_s7 = inlined_call_operand.vmem [shape: f32[2,64,32], index: 7, kind: input, shape index: {}]   ;;  %s3030_s8 = inlined_call_operand.vmem [shape: f32[2,8,128], index: 8, kind: input, shape index: {}]   ;;  %s3031_s9 = inlined_call_operand.vmem [shape: f32[32,32], index: 9, kind: input, shape index: {}]   ;;  %s3032_s10 = inlined_call_operand.vmem [shape: f32[32,128], index: 10, kind: input, shape index: {}]   ;;  %s3033_s11 = inlined_call_operand.vmem [shape: f32[4,128], index: 11, kind: input, shape index: {}]   ;;  %s3034_s12 = inlined_call_operand.hbm [shape: f32[2,128], index: 12, kind: output, shape index: {}]  }
   0x1   :  { %18 = vsyncpa [#allocation6], 0 }
   0x2   :  { %19 = vsyncpa [#allocation4], 0  ;;  %s43_s23 = sshll.u32 %s3026_s4, 4  ;;  %s2433_s24 = smov [#allocation5]   ;;  %s44_s23 = int_to_ptr.hbm [resolvable:$true] %s43_s23 }
   0x3   :  { %s45_s25 = sshll.u32 %s2433_s24, 4  ;;  %s28_s28 = sshll.u32 %s3024_s2, 4  ;;  %s46_s25 = int_to_ptr.vmem [resolvable:$true] %s45_s25  ;;  %s29_s28 = int_to_ptr.hbm [resolvable:$true] %s28_s28 }
   0x4   :  { %s2434_s29 = smov 128   ;;  %s2435_s30 = smov 8  }
   0x5   :  { %51 = dma.hbm_to_vmem [thread:$0]  %s44_s23, 8192, %s46_s25, [#allocation6], %s2434_s29, %s2434_s29, %s2435_s30  }
   0x6   :  { %s2436_s13 = smov [#allocation2]   ;;  %s58_s17 = sshll.u32 %s3028_s6, 4  ;;  %s59_s17 = int_to_ptr.hbm [resolvable:$true] %s58_s17 }
   0x7   :  { %s30_s14 = sshll.u32 %s2436_s13, 4  ;;  %s2437_s4 = smov [#allocation7]   ;;  %s31_s14 = int_to_ptr.vmem [resolvable:$true] %s30_s14 }
   0x8   :  { %36 = dma.hbm_to_vmem [thread:$0]  %s29_s28, 1664, %s31_s14, [#allocation3], %s2434_s29, %s2434_s29, %s2435_s30  }
   0x9   :  { %s60_s18 = sshll.u32 %s2437_s4, 4  ;;  %s61_s18 = int_to_ptr.vmem [resolvable:$true] %s60_s18 }
   0xa   :  { %66 = dma.hbm_to_vmem [thread:$0]  %s59_s17, 1024, %s61_s18, [#allocation6], %s2434_s29, %s2434_s29, %s2435_s30  }
   0xb   :  { %2427 = dma.done.wait [#allocation3], 1664  }
   0xc   :  { %2428 = vsyncadd [#allocation3], 4294965632 }
   0xd   :  { %2429 = dma.done.wait [#allocation6], 9216  }
   0xe   :  { %2430 = vsyncadd [#allocation6], 4294958080  ;;  %v2438_v0 = vmov 0   ;;  %vm127_vm0 = vcmask 1043456   ;;  %v89_v1 = vld [vmem:[%s3022_s0] sm:$0xff]  ;;  %v116_v3 = vld [vmem:[#allocation2 + $0x58] sm:$0xff]  ;;  %v91_v16 = vlaneseq }
   0xf   :  { %2231 = vset.pattern.permute.xlu0 %v2438_v0  ;;  %v117_v2 = vld [vmem:[#allocation2 + $0x60] sm:$0xf]  ;;  %v115_v4 = vld [vmem:[#allocation2 + $0x50] sm:$0xff]  ;;  %v114_v5 = vld [vmem:[#allocation2 + $0x48] sm:$0xff]  ;;  %vm120_vm1 = vcmask 818176   ;;  %v2439_v19 = vmov 0.0  }
  0x10   :  { %94 = vperm.xlu0 %2231, %v89_v1   ;;  %2111 = vmatpush.msk.msra.mxu0 %vm127_vm0, %v117_v2  ;;  %v90_v6 = vld [vmem:[%s3022_s0 + $0x8] sm:$0xff]  ;;  %v113_v7 = vld [vmem:[#allocation2 + $0x40] sm:$0xff]  ;;  %v112_v8 = vld [vmem:[#allocation2 + $0x38] sm:$0xff]  ;;  %v2523_v17 = vand.u32 127, %v91_v16  ;;  %vm155_vm4 = vcmask 261120   ;;  %v2440_v31 = vmov 32.0  }
  0x11   :  { %v111_v9 = vld [vmem:[#allocation2 + $0x30] sm:$0xff]  ;;  %v110_v10 = vld [vmem:[#allocation2 + $0x28] sm:$0xff]  ;;  %v109_v11 = vld [vmem:[#allocation2 + $0x20] sm:$0xff]  ;;  %2232 = vrcp.f32 %v2440_v31  ;;  %vm305_vm12 = vcmask 130048   ;;  %s2441_s18 = smov [#allocation8]  }
  0x12   :  { %135 = vmatpush.msra.mxu0 %v116_v3  ;;  %v108_v12 = vld [vmem:[#allocation2 + $0x18] sm:$0xff]  ;;  %v107_v13 = vld [vmem:[#allocation2 + $0x10] sm:$0xff]  ;;  %v106_v14 = vld [vmem:[#allocation2 + $0x8] sm:$0xff]  ;;  %s2096_s2 = sshll.u32 %s2441_s18, 4  ;;  %s2097_s2 = int_to_ptr.vmem [resolvable:$true] %s2096_s2 }
  0x13   :  { %v105_v15 = vld [vmem:[#allocation2] sm:$0xff]  ;;  %v119_v27 = vld [vmem:[%s3025_s3 + $0x8] sm:$0xff]  ;;  %v248_v50 = vld [vmem:[#allocation5 + $0x10] sm:$0xff] }
  0x14   :  { %136 = vmatpush.msra.mxu0 %v115_v4  ;;  %v118_v23 = vld [vmem:[%s3025_s3] sm:$0xff]  ;;  %v579_v51 = vld [vmem:[#allocation5 + $0x90] sm:$0xff]  ;;  %v247_v52 = vld [vmem:[#allocation5 + $0x8] sm:$0xff] }
  0x15   :  { %v249_v48 = vld [vmem:[#allocation5 + $0x18] sm:$0xff]  ;;  %v578_v53 = vld [vmem:[#allocation5 + $0x88] sm:$0xff]  ;;  %v246_v54 = vld [vmem:[#allocation5] sm:$0xff] }
  0x16   :  { %137 = vmatpush.msra.mxu0 %v114_v5  ;;  %v580_v49 = vld [vmem:[#allocation5 + $0x98] sm:$0xff]  ;;  %262 = vmatpush.msra.mxu2 %v249_v48  ;;  %v577_v55 = vld [vmem:[#allocation5 + $0x80] sm:$0xff]  ;;  %v385_v61 = vld [vmem:[#allocation5 + $0x50] sm:$0xff] }
  0x17   :  { %v2233_v32 = vpop.eup %2232  ;;  %v386_v59 = vld [vmem:[#allocation5 + $0x58] sm:$0xff]  ;;  %v746_v62 = vld [vmem:[#allocation5 + $0xd0] sm:$0xff]  ;;  %v384_v1 = vld [vmem:[#allocation5 + $0x48] sm:$0xff] }
  0x18   :  { %97 = vperm.xlu0 %2231, %v90_v6   ;;  %138 = vmatpush.msra.mxu0 %v113_v7  ;;  %v163_v33 = vmul.f32 32.0, %v2233_v32  ;;  %vm167_vm5 = vweird.f32 %v2233_v32  ;;  %v747_v60 = vld [vmem:[#allocation5 + $0xd8] sm:$0xff]  ;;  %v745_v2 = vld [vmem:[#allocation5 + $0xc8] sm:$0xff]  ;;  %v383_v6 = vld [vmem:[#allocation5 + $0x40] sm:$0xff] }
  0x19   :  { %263 = vmatpush.msra.mxu2 %v248_v50  ;;  %v744_v7 = vld [vmem:[#allocation5 + $0xc0] sm:$0xff] }
  0x1a   :  { %139 = vmatpush.msra.mxu0 %v112_v8  ;;  %v164_v34 = vsub.f32 1.0, %v163_v33  ;;  %v216_v33 = vld [vmem:[%s3027_s5] sm:$0xf] }
  0x1b   :  { %264 = vmatpush.msra.mxu2 %v247_v52 }
  0x1c   :  { %140 = vmatpush.msra.mxu0 %v111_v9  ;;  %v165_v35 = vmul.f32 %v2233_v32, %v164_v34  ;;  %v357_v34 = vld [vmem:[#allocation5 + $0x30] sm:$0xff] }
  0x1d   :  { %265 = vmatpush.msra.mxu2 %v246_v54 }
  0x1e   :  { %141 = vmatpush.msra.mxu0 %v110_v10  ;;  %v166_v36 = vadd.f32 %v2233_v32, %v165_v35  ;;  %v154_v10 = vld [vmem:[%s3033_s11] sm:$0xf]  ;;  %v356_v35 = vld [vmem:[#allocation5 + $0x28] sm:$0xff] }
  0x1f   :  { %399 = vmatpush.msrb.mxu2 %v386_v59 }
  0x20   :  { %142 = vmatpush.msra.mxu0 %v109_v11  ;;  %v2537_v37 = vsel %vm167_vm5, %v2233_v32, %v166_v36  ;;  %v358_v32 = vld [vmem:[#allocation5 + $0x38] sm:$0xff]  ;;  %v355_v36 = vld [vmem:[#allocation5 + $0x20] sm:$0xff] }
  0x21   :  { %400 = vmatpush.msrb.mxu2 %v385_v61 }
  0x22   :  { %143 = vmatpush.msra.mxu0 %v108_v12 }
  0x23   :  { %401 = vmatpush.msrb.mxu2 %v384_v1  ;;  %v214_v1 = vld [vmem:[%s3023_s1 + $0x8] sm:$0xff] }
  0x24   :  { %144 = vmatpush.msra.mxu0 %v107_v13 }
  0x25   :  { %402 = vmatpush.msrb.mxu2 %v383_v6 }
  0x26   :  { %145 = vmatpush.msra.mxu0 %v106_v14 }
  0x28   :  { %146 = vmatpush.msra.mxu0 %v105_v15  ;;  %v207_v15 = vperm.slane %v154_v10, 0 }
  0x2a   :  { %593 = vmatpush.msrb.mxu0 %v580_v49 }
  0x2c   :  { %594 = vmatpush.msrb.mxu0 %v579_v51 }
  0x2e   :  { %595 = vmatpush.msrb.mxu0 %v578_v53 }
  0x30   :  { %596 = vmatpush.msrb.mxu0 %v577_v55 }
  0x82   :  { %v95_v18 = vpop.permute.xlu0 %94 }
  0x83   :  { %vm99_vm2 = vcmp.eq.s32.totalorder %v2523_v17, %v95_v18 }
  0x84   :  { %v2109_v20 = vsel %vm99_vm2, 1.0, %v2439_v19 }
  0x85   :  { %2112 = vmatmul.msk.f32.vlgmr.msra.gmra.mxu0 %vm120_vm1, %v2109_v20 }
  0x86   :  { %760 = vmatpush.msra.mxu0 %v747_v60  ;;  %v213_v60 = vld [vmem:[%s3023_s1] sm:$0xff] }
  0x88   :  { %761 = vmatpush.msra.mxu0 %v746_v62 }
  0x8a   :  { %v98_v21 = vpop.permute.xlu0 %97  ;;  %762 = vmatpush.msra.mxu0 %v745_v2 }
  0x8b   :  { %vm100_vm3 = vcmp.eq.s32.totalorder %v2523_v17, %v98_v21  ;;  %v210_v21 = vperm.slane %v154_v10, 1 }
  0x8c   :  { %v2110_v22 = vsel %vm100_vm3, 1.0, %v2439_v19  ;;  %763 = vmatpush.msra.mxu0 %v744_v7 }
  0x8d   :  { %2113 = vmatmul.msk.f32.gmra.mxu0 %vm120_vm1, %v2110_v22 }
 0x102   :  { %v148_v24 = vpop.f32.mrf.mxu0 }
 0x103   :  { %v149_v25 = vadd.f32 %v148_v24, %v118_v23 }
 0x105   :  { %v156_v26 = vsel %vm155_vm4, %v149_v25, 0.0 }
 0x106   :  { %157 = vadd.xlane.f32.xlu1 %v156_v26 }
 0x10a   :  { %v151_v28 = vpop.f32.mrf.mxu0 }
 0x10b   :  { %v152_v29 = vadd.f32 %v151_v28, %v119_v27 }
 0x10d   :  { %v159_v30 = vsel %vm155_vm4, %v152_v29, 0.0 }
 0x10e   :  { %160 = vadd.xlane.f32.xlu1 %v159_v30 }
 0x179   :  { %v158_v38 = vpop.xlane.xlu1 %157 }
 0x17a   :  { %v169_v39 = vmul.f32 %v2537_v37, %v158_v38  ;;  %v494_v38 = vld [vmem:[#allocation5 + $0x78] sm:$0xff] }
 0x17c   :  { %v2540_v40 = vsub.f32 %v149_v25, %v169_v39  ;;  %v493_v39 = vld [vmem:[#allocation5 + $0x70] sm:$0xff] }
 0x17e   :  { %v173_v41 = vmul.f32 %v2540_v40, %v2540_v40 }
 0x180   :  { %v175_v42 = vsel %vm155_vm4, %v173_v41, 0.0  ;;  %v491_v41 = vld [vmem:[#allocation5 + $0x60] sm:$0xff] }
 0x181   :  { %176 = vadd.xlane.f32.xlu2 %v175_v42  ;;  %v161_v43 = vpop.xlane.xlu1 %160 }
 0x182   :  { %v170_v44 = vmul.f32 %v2537_v37, %v161_v43 }
 0x184   :  { %v2546_v45 = vsub.f32 %v152_v29, %v170_v44 }
 0x186   :  { %v174_v46 = vmul.f32 %v2546_v45, %v2546_v45 }
 0x188   :  { %v178_v47 = vsel %vm155_vm4, %v174_v46, 0.0 }
 0x189   :  { %179 = vadd.xlane.f32.xlu2 %v178_v47 }
 0x1f4   :  { %v177_v56 = vpop.xlane.xlu2 %176 }
 0x1f5   :  { %v181_v57 = vmul.f32 %v177_v56, %v2537_v37 }
 0x1f7   :  { %v183_v58 = vadd.f32 1e-12, %v181_v57 }
 0x1f9   :  { %2234 = vrsqrt.f32 %v183_v58  ;;  %vm191_vm7 = vweird.f32 %v183_v58 }
 0x1fc   :  { %v180_v63 = vpop.xlane.xlu2 %179 }
 0x1fd   :  { %v182_v0 = vmul.f32 %v180_v63, %v2537_v37 }
 0x1ff   :  { %v2235_v3 = vpop.eup %2234  ;;  %v184_v4 = vadd.f32 1e-12, %v182_v0 }
 0x200   :  { %v186_v5 = vmul.f32 %v2235_v3, %v183_v58  ;;  %vm192_vm6 = vweird.f32 %v2235_v3 }
 0x201   :  { %2236 = vrsqrt.f32 %v184_v4  ;;  %vm193_vm8 = vmor %vm191_vm7, %vm192_vm6  ;;  %vm201_vm10 = vweird.f32 %v184_v4 }
 0x202   :  { %v187_v8 = vmul.f32 %v2235_v3, %v186_v5 }
 0x204   :  { %v188_v9 = vmul.f32 0.5, %v187_v8 }
 0x206   :  { %v189_v11 = vsub.f32 1.5, %v188_v9 }
 0x207   :  { %v2237_v12 = vpop.eup %2236 }
 0x208   :  { %v190_v13 = vmul.f32 %v2235_v3, %v189_v11  ;;  %v196_v14 = vmul.f32 %v2237_v12, %v184_v4  ;;  %vm202_vm9 = vweird.f32 %v2237_v12 }
 0x209   :  { %vm203_vm11 = vmor %vm201_vm10, %vm202_vm9 }
 0x20a   :  { %v194_v18 = vsel %vm193_vm8, %v2235_v3, %v190_v13  ;;  %v197_v20 = vmul.f32 %v2237_v12, %v196_v14 }
 0x20b   :  { %v205_v22 = vmul.f32 %v194_v18, %v2540_v40  ;;  %v492_v40 = vld [vmem:[#allocation5 + $0x68] sm:$0xff] }
 0x20c   :  { %v198_v23 = vmul.f32 0.5, %v197_v20 }
 0x20d   :  { %v208_v24 = vmul.f32 %v207_v15, %v205_v22 }
 0x20e   :  { %v199_v25 = vsub.f32 1.5, %v198_v23 }
 0x20f   :  { %v2557_v26 = vadd.f32 %v210_v21, %v208_v24 }
 0x210   :  { %v200_v27 = vmul.f32 %v2237_v12, %v199_v25 }
 0x211   :  { %2117 = vmatmul.msk.f32.vlgmr.msra.gmra.mxu2 %vm155_vm4, %v2557_v26  ;;  %2137 = vmatmul.msk.f32.vlgmr.msrb.gmra.mxu0 %vm155_vm4, %v2557_v26 }
 0x212   :  { %v204_v28 = vsel %vm203_vm11, %v2237_v12, %v200_v27 }
 0x213   :  { %v206_v29 = vmul.f32 %v204_v28, %v2546_v45 }
 0x215   :  { %v209_v30 = vmul.f32 %v207_v15, %v206_v29 }
 0x217   :  { %v2564_v31 = vadd.f32 %v210_v21, %v209_v30 }
 0x219   :  { %2114 = vmatpush.xpose.msk.msra.mxu1 %vm155_vm4, %v2564_v31  ;;  %2118 = vmatmul.msk.f32.gmra.mxu2 %vm155_vm4, %v2564_v31 }
 0x21a   :  { %2119 = vmatpush.xpose.msk.msra.mxu3 %vm155_vm4, %v2564_v31  ;;  %2138 = vmatmul.msk.f32.gmra.mxu0 %vm155_vm4, %v2564_v31 }
 0x21d   :  { %2115 = vmatpush.xpose.msk.msra.mxu1 %vm155_vm4, %v2557_v26 }
 0x21e   :  { %2120 = vmatpush.xpose.msk.msra.mxu3 %vm155_vm4, %v2557_v26 }
 0x220   :  { %2116 = vmatmul.msk.f32.vlgmr.msra.gmra.mxu1 %vm155_vm4, %v216_v33 }
 0x221   :  { %371 = vmatpush.msrb.mxu1 %v358_v32  ;;  %2125 = vmatmul.msk.f32.vlgmr.msrb.gmra.mxu2 %vm155_vm4, %v2557_v26 }
 0x222   :  { %2127 = vmatpush.xpose.msk.msrb.mxu3 %vm155_vm4, %v2564_v31  ;;  %2147 = vmatmul.msk.f32.vlgmr.msra.gmra.mxu0 %vm155_vm4, %v2557_v26 }
 0x223   :  { %372 = vmatpush.msrb.mxu1 %v357_v34 }
 0x225   :  { %373 = vmatpush.msrb.mxu1 %v356_v35 }
 0x226   :  { %2128 = vmatpush.xpose.msk.msrb.mxu3 %vm155_vm4, %v2557_v26 }
 0x227   :  { %374 = vmatpush.msrb.mxu1 %v355_v36 }
 0x228   :  { %2123 = vmatmul.msk.f32.vlgmr.msrb.gmra.mxu1 %vm155_vm4, %v2557_v26 }
 0x229   :  { %507 = vmatpush.msra.mxu1 %v494_v38  ;;  %2126 = vmatmul.msk.f32.gmra.mxu2 %vm155_vm4, %v2564_v31 }
 0x22a   :  { %2148 = vmatmul.msk.f32.gmra.mxu0 %vm155_vm4, %v2564_v31 }
 0x22b   :  { %508 = vmatpush.msra.mxu1 %v493_v39 }
 0x22d   :  { %509 = vmatpush.msra.mxu1 %v492_v40 }
 0x22f   :  { %510 = vmatpush.msra.mxu1 %v491_v41 }
 0x230   :  { %2124 = vmatmul.msk.f32.gmra.mxu1 %vm155_vm4, %v2564_v31 }
 0x231   :  { %2139 = vmatpush.xpose.msk.msrb.mxu1 %vm155_vm4, %v2564_v31 }
 0x235   :  { %2140 = vmatpush.xpose.msk.msrb.mxu1 %vm155_vm4, %v2557_v26 }
 0x238   :  { %2131 = vmatmul.msk.f32.vlgmr.msra.gmra.mxu1 %vm155_vm4, %v2557_v26 }
 0x239   :  { %2149 = vmatpush.xpose.msk.msra.mxu1 %vm155_vm4, %v2564_v31 }
 0x23d   :  { %2150 = vmatpush.xpose.msk.msra.mxu1 %vm155_vm4, %v2557_v26 }
 0x240   :  { %2132 = vmatmul.msk.f32.gmra.mxu1 %vm155_vm4, %v2564_v31 }
 0x28e   :  { %v598_v42 = vpop.f32.mrf.mxu0 }
 0x28f   :  { %2141 = vmatmul.msk.f32.vlgmr.msrb.gmra.mxu1 %vm155_vm4, %v598_v42 }
 0x294   :  { %v267_v43 = vpop.f32.mrf.mxu2 }
 0x295   :  { %2121 = vmatmul.msk.f32.vlgmr.msra.gmra.mxu3 %vm155_vm4, %v267_v43 }
 0x297   :  { %v601_v44 = vpop.f32.mrf.mxu0 }
 0x298   :  { %2142 = vmatmul.msk.f32.gmra.mxu1 %vm155_vm4, %v601_v44 }
 0x29c   :  { %v270_v45 = vpop.f32.mrf.mxu2 }
 0x29d   :  { %v2613_v46 = vpop.f32.mrf.mxu1  ;;  %2122 = vmatmul.msk.f32.gmra.mxu3 %vm155_vm4, %v270_v45  ;;  %v688_v45 = vld [vmem:[#allocation5 + $0xb8] sm:$0xff] }
 0x29e   :  { %v410_v57 = vperm.slane %v2613_v46, 1  ;;  %v273_v8 = vperm.slane %v2613_v46, 0  ;;  %v604_v18 = vperm.slane %v2613_v46, 2  ;;  %v771_v28 = vperm.slane %v2613_v46, 3  ;;  %v687_v46 = vld [vmem:[#allocation5 + $0xb0] sm:$0xff] }
 0x29f   :  { %v765_v47 = vpop.f32.mrf.mxu0 }
 0x2a0   :  { %2151 = vmatmul.msk.f32.vlgmr.msra.gmra.mxu1 %vm155_vm4, %v765_v47 }
 0x2a4   :  { %v404_v48 = vpop.f32.mrf.mxu2 }
 0x2a5   :  { %2129 = vmatmul.msk.f32.vlgmr.msrb.gmra.mxu3 %vm155_vm4, %v404_v48  ;;  %v376_v49 = vpop.f32.mrf.mxu1  ;;  %v686_v48 = vld [vmem:[#allocation5 + $0xa8] sm:$0xff] }
 0x2a7   :  { %v768_v50 = vpop.f32.mrf.mxu0 }
 0x2a8   :  { %2152 = vmatmul.msk.f32.gmra.mxu1 %vm155_vm4, %v768_v50 }
 0x2ac   :  { %v407_v51 = vpop.f32.mrf.mxu2 }
 0x2ad   :  { %2130 = vmatmul.msk.f32.gmra.mxu3 %vm155_vm4, %v407_v51  ;;  %v379_v52 = vpop.f32.mrf.mxu1 }
 0x2ae   :  { %567 = vmatpush.msra.mxu3 %v379_v52 }
 0x2b0   :  { %568 = vmatpush.msra.mxu3 %v376_v49  ;;  %v685_v49 = vld [vmem:[#allocation5 + $0xa0] sm:$0xff] }
 0x2b5   :  { %v512_v53 = vpop.f32.mrf.mxu1 }
 0x2bd   :  { %v515_v54 = vpop.f32.mrf.mxu1 }
 0x2be   :  { %538 = vmatpush.msra.mxu2 %v515_v54 }
 0x2c0   :  { %539 = vmatpush.msra.mxu2 %v512_v53 }
 0x2c2   :  { %701 = vmatpush.msrb.mxu2 %v688_v45 }
 0x2c4   :  { %702 = vmatpush.msrb.mxu2 %v687_v46 }
 0x2c6   :  { %703 = vmatpush.msrb.mxu2 %v686_v48 }
 0x2c8   :  { %704 = vmatpush.msrb.mxu2 %v685_v49 }
 0x30c   :  { %v628_v6 = vpop.f32.mrf.mxu1 }
 0x30d   :  { %v629_v22 = vadd.f32 %v628_v6, %v604_v18 }
 0x30f   :  { %v634_v30 = vadd.f32 %v629_v22, %v213_v60  ;;  %v853_v22 = vld [vmem:[#allocation5 + $0xe8] sm:$0xff] }
 0x311   :  { %v636_v35 = vsel %vm305_vm12, %v634_v30, -inf }
 0x315   :  { %v631_v15 = vpop.f32.mrf.mxu1 }
 0x316   :  { %v632_v32 = vadd.f32 %v631_v15, %v604_v18 }
 0x318   :  { %v297_v55 = vpop.f32.mrf.mxu3  ;;  %v2643_v36 = vadd.f32 %v632_v32, %v214_v1 }
 0x319   :  { %v298_v13 = vadd.f32 %v297_v55, %v273_v8 }
 0x31a   :  { %v639_v41 = vsel %vm305_vm12, %v2643_v36, -inf }
 0x31b   :  { %v303_v20 = vadd.f32 %v298_v13, %v213_v60 }
 0x31d   :  { %v306_v25 = vsel %vm305_vm12, %v303_v20, -inf  ;;  %v795_v27 = vpop.f32.mrf.mxu1 }
 0x31e   :  { %v796_v33 = vadd.f32 %v795_v27, %v771_v28 }
 0x320   :  { %v300_v56 = vpop.f32.mrf.mxu3  ;;  %v2645_v38 = vadd.f32 %v796_v33, %v213_v60 }
 0x321   :  { %v301_v23 = vadd.f32 %v300_v56, %v273_v8  ;;  %v855_v8 = vld [vmem:[#allocation5 + $0xf8] sm:$0xff] }
 0x322   :  { %v803_v42 = vsel %vm305_vm12, %v2645_v38, -inf }
 0x323   :  { %v304_v29 = vadd.f32 %v301_v23, %v214_v1 }
 0x325   :  { %v309_v34 = vsel %vm305_vm12, %v304_v29, -inf  ;;  %v798_v39 = vpop.f32.mrf.mxu1 }
 0x326   :  { %v799_v40 = vadd.f32 %v798_v39, %v771_v28  ;;  %v852_v28 = vld [vmem:[#allocation5 + $0xe0] sm:$0xff] }
 0x328   :  { %v434_v58 = vpop.f32.mrf.mxu3  ;;  %v2651_v43 = vadd.f32 %v799_v40, %v214_v1 }
 0x329   :  { %v435_v59 = vadd.f32 %v434_v58, %v410_v57 }
 0x32a   :  { %v806_v44 = vsel %vm305_vm12, %v2651_v43, -inf }
 0x32b   :  { %v440_v61 = vadd.f32 %v435_v59, %v213_v60 }
 0x32d   :  { %v442_v62 = vsel %vm305_vm12, %v440_v61, -inf }
 0x32e   :  { %443 = vmax.xlane.f32.xlu0 %v442_v62 }
 0x330   :  { %v437_v63 = vpop.f32.mrf.mxu3 }
 0x331   :  { %v438_v0 = vadd.f32 %v437_v63, %v410_v57 }
 0x333   :  { %v441_v2 = vadd.f32 %v438_v0, %v214_v1 }
 0x335   :  { %v445_v3 = vsel %vm305_vm12, %v441_v2, -inf }
 0x336   :  { %446 = vmax.xlane.f32.xlu1 %v445_v3 }
 0x3a1   :  { %v444_v4 = vpop.xlane.xlu0 %443 }
 0x3a2   :  { %v448_v5 = vsub.f32 %v440_v61, %v444_v4 }
 0x3a4   :  { %v450_v7 = vmul.f32 1.442695, %v448_v5 }
 0x3a6   :  { %2238 = vpow2.f32 %v450_v7 }
 0x3a9   :  { %v447_v9 = vpop.xlane.xlu1 %446 }
 0x3aa   :  { %v449_v10 = vsub.f32 %v441_v2, %v447_v9 }
 0x3ac   :  { %v2630_v11 = vpop.eup %2238  ;;  %v452_v12 = vmul.f32 1.442695, %v449_v10 }
 0x3ad   :  { %v454_v14 = vsel %vm305_vm12, %v2630_v11, 0.0 }
 0x3ae   :  { %2240 = vpow2.f32 %v452_v12  ;;  %455 = vadd.xlane.f32.xlu2 %v454_v14 }
 0x3b4   :  { %v2635_v21 = vpop.eup %2240 }
 0x3b5   :  { %v457_v24 = vsel %vm305_vm12, %v2635_v21, 0.0 }
 0x3b6   :  { %458 = vadd.xlane.f32.xlu1 %v457_v24  ;;  %307 = vmax.xlane.f32.xlu2 %v306_v25 }
 0x3be   :  { %310 = vmax.xlane.f32.xlu1 %v309_v34  ;;  %637 = vmax.xlane.f32.xlu2 %v636_v35 }
 0x3c6   :  { %640 = vmax.xlane.f32.xlu1 %v639_v41  ;;  %804 = vmax.xlane.f32.xlu2 %v803_v42 }
 0x3ce   :  { %807 = vmax.xlane.f32.xlu1 %v806_v44 }
 0x421   :  { %v456_v47 = vpop.xlane.xlu2 %455 }
 0x422   :  { %2242 = vrcp.f32 %v456_v47  ;;  %v471_v56 = vand.u32 2147483648, %v456_v47  ;;  %v469_v59 = vand.u32 2147483647, %v456_v47  ;;  %vm465_vm14 = vweird.f32 %v456_v47 }
 0x424   :  { %v472_v62 = vor.u32 1.1754944e-38, %v471_v56  ;;  %vm470_vm0 = vcmp.eq.f32.partialorder %v469_v59, 8.507059e+37 }
 0x428   :  { %v2243_v50 = vpop.eup %2242 }
 0x429   :  { %v461_v51 = vmul.f32 %v2243_v50, %v456_v47  ;;  %v459_v52 = vpop.xlane.xlu1 %458  ;;  %v308_v53 = vpop.xlane.xlu2 %307  ;;  %vm466_vm13 = vweird.f32 %v2243_v50 }
 0x42a   :  { %2244 = vrcp.f32 %v459_v52  ;;  %v312_v54 = vsub.f32 %v303_v20, %v308_v53  ;;  %vm467_vm15 = vmor %vm465_vm14, %vm466_vm13  ;;  %v486_v10 = vand.u32 2147483648, %v459_v52  ;;  %v484_v18 = vand.u32 2147483647, %v459_v52  ;;  %v854_v20 = vld [vmem:[#allocation5 + $0xf0] sm:$0xff] }
 0x42b   :  { %v462_v55 = vsub.f32 1.0, %v461_v51  ;;  %vm480_vm2 = vweird.f32 %v459_v52 }
 0x42c   :  { %v314_v57 = vmul.f32 1.442695, %v312_v54  ;;  %v487_v23 = vor.u32 1.1754944e-38, %v486_v10  ;;  %vm485_vm5 = vcmp.eq.f32.partialorder %v484_v18, 8.507059e+37 }
 0x42d   :  { %v463_v58 = vmul.f32 %v2243_v50, %v462_v55 }
 0x42e   :  { %2246 = vpow2.f32 %v314_v57 }
 0x42f   :  { %v464_v60 = vadd.f32 %v2243_v50, %v463_v58 }
 0x430   :  { %v2245_v61 = vpop.eup %2244 }
 0x431   :  { %v468_v63 = vsel %vm467_vm15, %v2243_v50, %v464_v60  ;;  %v476_v0 = vmul.f32 %v2245_v61, %v459_v52  ;;  %v311_v1 = vpop.xlane.xlu1 %310  ;;  %v638_v2 = vpop.xlane.xlu2 %637  ;;  %vm481_vm1 = vweird.f32 %v2245_v61 }
 0x432   :  { %v473_v3 = vsel %vm470_vm0, %v472_v62, %v468_v63  ;;  %v313_v4 = vsub.f32 %v304_v29, %v311_v1  ;;  %v642_v5 = vsub.f32 %v634_v30, %v638_v2  ;;  %vm482_vm3 = vmor %vm480_vm2, %vm481_vm1 }
 0x433   :  { %v477_v6 = vsub.f32 1.0, %v476_v0  ;;  %v474_v7 = vmul.f32 %v2630_v11, %v473_v3 }
 0x434   :  { %v2656_v9 = vpop.eup %2246  ;;  %v316_v12 = vmul.f32 1.442695, %v313_v4  ;;  %v644_v13 = vmul.f32 1.442695, %v642_v5 }
 0x435   :  { %v478_v14 = vmul.f32 %v2245_v61, %v477_v6  ;;  %2133 = vmatmul.msk.f32.vlgmr.msra.gmra.mxu2 %vm305_vm12, %v474_v7  ;;  %v318_v15 = vsel %vm305_vm12, %v2656_v9, 0.0 }
 0x436   :  { %2248 = vpow2.f32 %v316_v12  ;;  %319 = vadd.xlane.f32.xlu2 %v318_v15  ;;  %868 = vmatpush.msra.mxu2 %v855_v8 }
 0x437   :  { %2250 = vpow2.f32 %v644_v13  ;;  %v479_v11 = vadd.f32 %v2245_v61, %v478_v14 }
 0x438   :  { %869 = vmatpush.msra.mxu2 %v854_v20 }
 0x439   :  { %v641_v24 = vpop.xlane.xlu1 %640  ;;  %v805_v25 = vpop.xlane.xlu2 %804  ;;  %v483_v27 = vsel %vm482_vm3, %v2245_v61, %v479_v11 }
 0x43a   :  { %v643_v29 = vsub.f32 %v2643_v36, %v641_v24  ;;  %v809_v30 = vsub.f32 %v2645_v38, %v805_v25  ;;  %v488_v32 = vsel %vm485_vm5, %v487_v23, %v483_v27  ;;  %870 = vmatpush.msra.mxu2 %v853_v22 }
 0x43b   :  { %v489_v33 = vmul.f32 %v2635_v21, %v488_v32 }
 0x43c   :  { %v2664_v34 = vpop.eup %2248  ;;  %v646_v35 = vmul.f32 1.442695, %v643_v29  ;;  %v811_v39 = vmul.f32 1.442695, %v809_v30  ;;  %871 = vmatpush.msra.mxu2 %v852_v28 }
 0x43d   :  { %v2666_v40 = vpop.eup %2250  ;;  %2134 = vmatmul.msk.f32.gmra.mxu2 %vm305_vm12, %v489_v33  ;;  %v321_v41 = vsel %vm305_vm12, %v2664_v34, 0.0 }
 0x43e   :  { %2252 = vpow2.f32 %v646_v35  ;;  %322 = vadd.xlane.f32.xlu1 %v321_v41  ;;  %v648_v36 = vsel %vm305_vm12, %v2666_v40, 0.0 }
 0x43f   :  { %2254 = vpow2.f32 %v811_v39  ;;  %649 = vadd.xlane.f32.xlu2 %v648_v36 }
 0x441   :  { %v808_v21 = vpop.xlane.xlu1 %807 }
 0x442   :  { %v810_v38 = vsub.f32 %v2651_v43, %v808_v21 }
 0x444   :  { %v2674_v42 = vpop.eup %2252  ;;  %v813_v44 = vmul.f32 1.442695, %v810_v38 }
 0x445   :  { %v2676_v45 = vpop.eup %2254  ;;  %2143 = vmatmul.msk.f32.vlgmr.msrb.gmra.mxu2 %vm155_vm4, %v2557_v26  ;;  %v651_v46 = vsel %vm305_vm12, %v2674_v42, 0.0 }
 0x446   :  { %2256 = vpow2.f32 %v813_v44  ;;  %652 = vadd.xlane.f32.xlu0 %v651_v46  ;;  %v815_v47 = vsel %vm305_vm12, %v2676_v45, 0.0 }
 0x447   :  { %816 = vadd.xlane.f32.xlu1 %v815_v47 }
 0x44c   :  { %v2684_v48 = vpop.eup %2256 }
 0x44d   :  { %2144 = vmatmul.msk.f32.gmra.mxu2 %vm155_vm4, %v2564_v31  ;;  %v818_v43 = vsel %vm305_vm12, %v2684_v48, 0.0 }
 0x44e   :  { %819 = vadd.xlane.f32.xlu2 %v818_v43 }
 0x455   :  { %2153 = vmatmul.msk.f32.vlgmr.msra.gmra.mxu2 %vm155_vm4, %v2557_v26 }
 0x45d   :  { %2154 = vmatmul.msk.f32.gmra.mxu2 %vm155_vm4, %v2564_v31 }
 0x4a9   :  { %v320_v49 = vpop.xlane.xlu2 %319 }
 0x4aa   :  { %2258 = vrcp.f32 %v320_v49  ;;  %v335_v55 = vand.u32 2147483648, %v320_v49  ;;  %v333_v57 = vand.u32 2147483647, %v320_v49  ;;  %vm329_vm7 = vweird.f32 %v320_v49 }
 0x4ac   :  { %v336_v60 = vor.u32 1.1754944e-38, %v335_v55  ;;  %vm334_vm9 = vcmp.eq.f32.partialorder %v333_v57, 8.507059e+37 }
 0x4b0   :  { %v2259_v50 = vpop.eup %2258 }
 0x4b1   :  { %v325_v51 = vmul.f32 %v2259_v50, %v320_v49  ;;  %v323_v52 = vpop.xlane.xlu1 %322  ;;  %vm330_vm6 = vweird.f32 %v2259_v50 }
 0x4b2   :  { %2260 = vrcp.f32 %v323_v52  ;;  %v650_v53 = vpop.xlane.xlu2 %649  ;;  %vm331_vm8 = vmor %vm329_vm7, %vm330_vm6  ;;  %v350_v7 = vand.u32 2147483648, %v323_v52  ;;  %vm344_vm11 = vweird.f32 %v323_v52  ;;  %v348_v10 = vand.u32 2147483647, %v323_v52 }
 0x4b3   :  { %v326_v54 = vsub.f32 1.0, %v325_v51  ;;  %2262 = vrcp.f32 %v650_v53  ;;  %v665_v30 = vand.u32 2147483648, %v650_v53  ;;  %vm659_vm0 = vweird.f32 %v650_v53 }
 0x4b4   :  { %v351_v20 = vor.u32 1.1754944e-38, %v350_v7  ;;  %vm349_vm14 = vcmp.eq.f32.partialorder %v348_v10, 8.507059e+37  ;;  %v663_v32 = vand.u32 2147483647, %v650_v53 }
 0x4b5   :  { %v327_v56 = vmul.f32 %v2259_v50, %v326_v54  ;;  %v666_v41 = vor.u32 1.1754944e-38, %v665_v30 }
 0x4b6   :  { %vm664_vm2 = vcmp.eq.f32.partialorder %v663_v32, 8.507059e+37 }
 0x4b7   :  { %v328_v58 = vadd.f32 %v2259_v50, %v327_v56 }
 0x4b8   :  { %v2261_v59 = vpop.eup %2260  ;;  %v2694_v61 = vpop.f32.mrf.mxu2 }
 0x4b9   :  { %v2263_v62 = vpop.eup %2262  ;;  %v332_v63 = vsel %vm331_vm8, %v2259_v50, %v328_v58  ;;  %v340_v0 = vmul.f32 %v2261_v59, %v323_v52  ;;  %v653_v1 = vpop.xlane.xlu0 %652  ;;  %vm345_vm10 = vweird.f32 %v2261_v59 }
 0x4ba   :  { %v337_v2 = vsel %vm334_vm9, %v336_v60, %v332_v63  ;;  %2264 = vrcp.f32 %v653_v1  ;;  %v655_v4 = vmul.f32 %v2263_v62, %v650_v53  ;;  %v817_v13 = vpop.xlane.xlu1 %816  ;;  %vm346_vm13 = vmor %vm344_vm11, %vm345_vm10  ;;  %vm660_vm15 = vweird.f32 %v2263_v62 }
 0x4bb   :  { %v341_v3 = vsub.f32 1.0, %v340_v0  ;;  %v338_v6 = vmul.f32 %v2656_v9, %v337_v2  ;;  %2266 = vrcp.f32 %v817_v13  ;;  %vm661_vm1 = vmor %vm659_vm0, %vm660_vm15  ;;  %v680_v46 = vand.u32 2147483648, %v653_v1 }
 0x4bc   :  { %v656_v12 = vsub.f32 1.0, %v655_v4  ;;  %vm674_vm5 = vweird.f32 %v653_v1  ;;  %v678_v43 = vand.u32 2147483647, %v653_v1  ;;  %v832_v57 = vand.u32 2147483648, %v817_v13 }
 0x4bd   :  { %v342_v5 = vmul.f32 %v2261_v59, %v341_v3  ;;  %2135 = vmatmul.msk.f32.vlgmr.msra.gmra.mxu3 %vm305_vm12, %v338_v6  ;;  %v681_v52 = vor.u32 1.1754944e-38, %v680_v46  ;;  %vm826_vm9 = vweird.f32 %v817_v13  ;;  %v830_v58 = vand.u32 2147483647, %v817_v13  ;;  %v965_v46 = vld [vmem:[#allocation7] sm:$0xff] }
 0x4be   :  { %v657_v11 = vmul.f32 %v2263_v62, %v656_v12  ;;  %vm679_vm7 = vcmp.eq.f32.partialorder %v678_v43, 8.507059e+37 }
 0x4bf   :  { %v343_v8 = vadd.f32 %v2261_v59, %v342_v5  ;;  %vm831_vm11 = vcmp.eq.f32.partialorder %v830_v58, 8.507059e+37 }
 0x4c0   :  { %v2698_v14 = vpop.f32.mrf.mxu2  ;;  %v2265_v15 = vpop.eup %2264  ;;  %v658_v24 = vadd.f32 %v2263_v62, %v657_v11 }
 0x4c1   :  { %v347_v18 = vsel %vm346_vm13, %v2261_v59, %v343_v8  ;;  %v670_v22 = vmul.f32 %v2265_v15, %v653_v1  ;;  %v820_v27 = vpop.xlane.xlu2 %819  ;;  %v2267_v29 = vpop.eup %2266  ;;  %vm675_vm3 = vweird.f32 %v2265_v15 }
 0x4c2   :  { %v352_v9 = vsel %vm349_vm14, %v351_v20, %v347_v18  ;;  %2268 = vrcp.f32 %v820_v27  ;;  %v662_v33 = vsel %vm661_vm1, %v2263_v62, %v658_v24  ;;  %v822_v39 = vmul.f32 %v2267_v29, %v817_v13  ;;  %vm676_vm6 = vmor %vm674_vm5, %vm675_vm3 }
 0x4c3   :  { %v353_v23 = vmul.f32 %v2664_v34, %v352_v9  ;;  %v671_v25 = vsub.f32 1.0, %v670_v22  ;;  %v667_v36 = vsel %vm664_vm2, %v666_v41, %v662_v33  ;;  %vm827_vm8 = vweird.f32 %v2267_v29 }
 0x4c4   :  { %v823_v34 = vsub.f32 1.0, %v822_v39  ;;  %v668_v47 = vmul.f32 %v2666_v40, %v667_v36  ;;  %vm828_vm10 = vmor %vm826_vm9, %vm827_vm8  ;;  %v833_v62 = vor.u32 1.1754944e-38, %v832_v57  ;;  %v847_v2 = vand.u32 2147483648, %v820_v27 }
 0x4c5   :  { %2136 = vmatmul.msk.f32.gmra.mxu3 %vm305_vm12, %v353_v23  ;;  %v672_v35 = vmul.f32 %v2265_v15, %v671_v25  ;;  %vm841_vm14 = vweird.f32 %v820_v27  ;;  %v845_v4 = vand.u32 2147483647, %v820_v27  ;;  %vm1026_vm8 = vcmask 523264  }
 0x4c6   :  { %v824_v49 = vmul.f32 %v2267_v29, %v823_v34  ;;  %v848_v5 = vor.u32 1.1754944e-38, %v847_v2 }
 0x4c7   :  { %v673_v38 = vadd.f32 %v2265_v15, %v672_v35  ;;  %vm846_vm0 = vcmp.eq.f32.partialorder %v845_v4, 8.507059e+37 }
 0x4c8   :  { %v706_v28 = vpop.f32.mrf.mxu2  ;;  %v2269_v44 = vpop.eup %2268  ;;  %v825_v54 = vadd.f32 %v2267_v29, %v824_v49 }
 0x4c9   :  { %v837_v50 = vmul.f32 %v2269_v44, %v820_v27  ;;  %v677_v51 = vsel %vm676_vm6, %v2265_v15, %v673_v38  ;;  %vm842_vm13 = vweird.f32 %v2269_v44  ;;  %v967_v38 = vld [vmem:[#allocation7 + $0x10] sm:$0xff] }
 0x4ca   :  { %v682_v53 = vsel %vm679_vm7, %v681_v52, %v677_v51  ;;  %v829_v59 = vsel %vm828_vm10, %v2267_v29, %v825_v54  ;;  %vm843_vm15 = vmor %vm841_vm14, %vm842_vm13 }
 0x4cb   :  { %v838_v55 = vsub.f32 1.0, %v837_v50  ;;  %v683_v40 = vmul.f32 %v2674_v42, %v682_v53  ;;  %v834_v63 = vsel %vm831_vm11, %v833_v62, %v829_v59 }
 0x4cc   :  { %v835_v3 = vmul.f32 %v2676_v45, %v834_v63  ;;  %v2713_v45 = vld [vmem:[%s3030_s8] sm:$0xff] }
 0x4cd   :  { %v839_v60 = vmul.f32 %v2269_v44, %v838_v55  ;;  %v910_v20 = vperm.slane %v2713_v45, 0 }
 0x4cf   :  { %v840_v1 = vadd.f32 %v2269_v44, %v839_v60  ;;  %v959_v60 = vperm.slane %v2713_v45, 1 }
 0x4d0   :  { %v709_v21 = vpop.f32.mrf.mxu2 }
 0x4d1   :  { %732 = vmatpush.msrb.mxu3 %v709_v21  ;;  %v844_v42 = vsel %vm843_vm15, %v2269_v44, %v840_v1  ;;  %v966_v44 = vld [vmem:[#allocation7 + $0x8] sm:$0xff]  ;;  %v962_v1 = vperm.slane %v2713_v45, 2 }
 0x4d2   :  { %v849_v6 = vsel %vm846_vm0, %v848_v5, %v844_v42 }
 0x4d3   :  { %733 = vmatpush.msrb.mxu3 %v706_v28  ;;  %v850_v7 = vmul.f32 %v2684_v48, %v849_v6 }
 0x4d4   :  { %2145 = vmatmul.msk.f32.vlgmr.msrb.gmra.mxu3 %vm305_vm12, %v668_v47 }
 0x4d8   :  { %v873_v56 = vpop.f32.mrf.mxu2 }
 0x4dc   :  { %2146 = vmatmul.msk.f32.gmra.mxu3 %vm305_vm12, %v683_v40 }
 0x4e0   :  { %v876_v0 = vpop.f32.mrf.mxu2 }
 0x4e1   :  { %899 = vmatpush.msra.mxu3 %v876_v0 }
 0x4e3   :  { %900 = vmatpush.msra.mxu3 %v873_v56 }
 0x4e4   :  { %2155 = vmatmul.msk.f32.vlgmr.msra.gmra.mxu3 %vm305_vm12, %v835_v3 }
 0x4ec   :  { %2156 = vmatmul.msk.f32.gmra.mxu3 %vm305_vm12, %v850_v7 }
 0x540   :  { %v570_v8 = vpop.f32.mrf.mxu3 }
 0x541   :  { %v571_v15 = vadd.f32 %v570_v8, %v2694_v61 }
 0x548   :  { %v573_v10 = vpop.f32.mrf.mxu3 }
 0x549   :  { %v574_v48 = vadd.f32 %v573_v10, %v2698_v14 }
 0x557   :  { %v735_v12 = vpop.f32.mrf.mxu3 }
 0x558   :  { %v741_v18 = vadd.f32 %v735_v12, %v571_v15  ;;  %v1024_v12 = vld [vmem:[%s3029_s7 + $0x38] sm:$0xff]  ;;  %v1022_v15 = vld [vmem:[%s3029_s7 + $0x28] sm:$0xff] }
 0x559   :  { %1041 = vmatpush.msrb.mxu1 %v1024_v12 }
 0x55f   :  { %v738_v13 = vpop.f32.mrf.mxu3 }
 0x560   :  { %v742_v24 = vadd.f32 %v738_v13, %v574_v48  ;;  %v1023_v13 = vld [vmem:[%s3029_s7 + $0x30] sm:$0xff]  ;;  %v969_v48 = vperm.slane %v2713_v45, 3 }
 0x561   :  { %1042 = vmatpush.msrb.mxu1 %v1023_v13 }
 0x563   :  { %1043 = vmatpush.msrb.mxu1 %v1022_v15 }
 0x567   :  { %v902_v11 = vpop.f32.mrf.mxu3 }
 0x568   :  { %v908_v22 = vadd.f32 %v902_v11, %v741_v18  ;;  %v1021_v18 = vld [vmem:[%s3029_s7 + $0x20] sm:$0xff]  ;;  %v1019_v11 = vld [vmem:[%s3029_s7 + $0x10] sm:$0xff] }
 0x569   :  { %1044 = vmatpush.msrb.mxu1 %v1021_v18 }
 0x56a   :  { %v911_v9 = vadd.f32 %v910_v20, %v908_v22  ;;  %v1018_v22 = vld [vmem:[%s3029_s7 + $0x8] sm:$0xff] }
 0x56c   :  { %v913_v23 = vadd.f32 %v911_v9, %v2557_v26  ;;  %v1017_v9 = vld [vmem:[%s3029_s7] sm:$0xff] }
 0x56e   :  { %v915_v25 = vsel %vm155_vm4, %v913_v23, 0.0 }
 0x56f   :  { %916 = vadd.xlane.f32.xlu0 %v915_v25  ;;  %v905_v27 = vpop.f32.mrf.mxu3 }
 0x570   :  { %v909_v28 = vadd.f32 %v905_v27, %v742_v24 }
 0x572   :  { %v912_v29 = vadd.f32 %v910_v20, %v909_v28  ;;  %v1020_v20 = vld [vmem:[%s3029_s7 + $0x18] sm:$0xff] }
 0x573   :  { %1045 = vmatpush.msrb.mxu1 %v1020_v20 }
 0x574   :  { %v914_v30 = vadd.f32 %v912_v29, %v2564_v31  ;;  %v968_v31 = vld [vmem:[#allocation7 + $0x18] sm:$0xff] }
 0x575   :  { %988 = vmatpush.msrb.mxu0 %v968_v31  ;;  %1046 = vmatpush.msrb.mxu1 %v1019_v11 }
 0x576   :  { %v918_v61 = vsel %vm155_vm4, %v914_v30, 0.0 }
 0x577   :  { %919 = vadd.xlane.f32.xlu1 %v918_v61  ;;  %989 = vmatpush.msrb.mxu0 %v967_v38 }
 0x578   :  { %1047 = vmatpush.msrb.mxu1 %v1018_v22 }
 0x579   :  { %990 = vmatpush.msrb.mxu0 %v966_v44 }
 0x57a   :  { %1048 = vmatpush.msrb.mxu1 %v1017_v9 }
 0x57b   :  { %991 = vmatpush.msrb.mxu0 %v965_v46 }
 0x5e2   :  { %v917_v32 = vpop.xlane.xlu0 %916 }
 0x5e3   :  { %v921_v33 = vmul.f32 %v917_v32, %v2537_v37 }
 0x5e5   :  { %v923_v35 = vsub.f32 %v913_v23, %v921_v33 }
 0x5e7   :  { %v925_v39 = vmul.f32 %v923_v35, %v923_v35 }
 0x5e9   :  { %v927_v14 = vsel %vm155_vm4, %v925_v39, 0.0 }
 0x5ea   :  { %928 = vadd.xlane.f32.xlu2 %v927_v14  ;;  %v920_v26 = vpop.xlane.xlu1 %919 }
 0x5eb   :  { %v922_v41 = vmul.f32 %v920_v26, %v2537_v37 }
 0x5ed   :  { %v924_v36 = vsub.f32 %v914_v30, %v922_v41 }
 0x5ef   :  { %v926_v34 = vmul.f32 %v924_v36, %v924_v36 }
 0x5f1   :  { %v930_v21 = vsel %vm155_vm4, %v926_v34, 0.0 }
 0x5f2   :  { %931 = vadd.xlane.f32.xlu0 %v930_v21 }
 0x65d   :  { %v929_v47 = vpop.xlane.xlu2 %928 }
 0x65e   :  { %v933_v43 = vmul.f32 %v929_v47, %v2537_v37  ;;  %v1025_v47 = vperm.slane %v2713_v45, 4 }
 0x660   :  { %v935_v49 = vadd.f32 1e-12, %v933_v43 }
 0x662   :  { %2270 = vrsqrt.f32 %v935_v49  ;;  %vm943_vm2 = vweird.f32 %v935_v49 }
 0x665   :  { %v932_v50 = vpop.xlane.xlu0 %931 }
 0x666   :  { %v934_v51 = vmul.f32 %v932_v50, %v2537_v37 }
 0x668   :  { %v2271_v52 = vpop.eup %2270  ;;  %v936_v53 = vadd.f32 1e-12, %v934_v51 }
 0x669   :  { %v938_v54 = vmul.f32 %v2271_v52, %v935_v49  ;;  %vm944_vm1 = vweird.f32 %v2271_v52 }
 0x66a   :  { %2272 = vrsqrt.f32 %v936_v53  ;;  %vm945_vm3 = vmor %vm943_vm2, %vm944_vm1  ;;  %vm953_vm6 = vweird.f32 %v936_v53 }
 0x66b   :  { %v939_v55 = vmul.f32 %v2271_v52, %v938_v54 }
 0x66d   :  { %v940_v56 = vmul.f32 0.5, %v939_v55 }
 0x66f   :  { %v941_v57 = vsub.f32 1.5, %v940_v56 }
 0x670   :  { %v2273_v58 = vpop.eup %2272 }
 0x671   :  { %v942_v40 = vmul.f32 %v2271_v52, %v941_v57  ;;  %v948_v59 = vmul.f32 %v2273_v58, %v936_v53  ;;  %vm954_vm5 = vweird.f32 %v2273_v58 }
 0x672   :  { %vm955_vm7 = vmor %vm953_vm6, %vm954_vm5 }
 0x673   :  { %v946_v62 = vsel %vm945_vm3, %v2271_v52, %v942_v40  ;;  %v949_v63 = vmul.f32 %v2273_v58, %v948_v59 }
 0x674   :  { %v957_v0 = vmul.f32 %v946_v62, %v923_v35 }
 0x675   :  { %v950_v2 = vmul.f32 0.5, %v949_v63 }
 0x676   :  { %v960_v3 = vmul.f32 %v959_v60, %v957_v0 }
 0x677   :  { %v951_v4 = vsub.f32 1.5, %v950_v2  ;;  %v1145_v2 = vld [vmem:[#allocation5 + $0x118] sm:$0xff] }
 0x678   :  { %v963_v42 = vadd.f32 %v962_v1, %v960_v3  ;;  %v1253_v3 = vld [vmem:[#allocation5 + $0x138] sm:$0xff]  ;;  %1158 = vmatpush.msrb.mxu3 %v1145_v2 }
 0x679   :  { %v952_v5 = vmul.f32 %v2273_v58, %v951_v4  ;;  %1266 = vmatpush.msra.mxu1 %v1253_v3  ;;  %v1144_v4 = vld [vmem:[#allocation5 + $0x110] sm:$0xff] }
 0x67a   :  { %2157 = vmatmul.msk.f32.vlgmr.msrb.gmra.mxu0 %vm155_vm4, %v963_v42  ;;  %1159 = vmatpush.msrb.mxu3 %v1144_v4 }
 0x67b   :  { %v956_v6 = vsel %vm955_vm7, %v2273_v58, %v952_v5  ;;  %v1143_v5 = vld [vmem:[#allocation5 + $0x108] sm:$0xff] }
 0x67c   :  { %v958_v7 = vmul.f32 %v956_v6, %v924_v36  ;;  %v1251_v6 = vld [vmem:[#allocation5 + $0x128] sm:$0xff]  ;;  %1160 = vmatpush.msrb.mxu3 %v1143_v5 }
 0x67e   :  { %v961_v8 = vmul.f32 %v959_v60, %v958_v7  ;;  %v1142_v7 = vld [vmem:[#allocation5 + $0x100] sm:$0xff] }
 0x67f   :  { %1161 = vmatpush.msrb.mxu3 %v1142_v7 }
 0x680   :  { %v964_v10 = vadd.f32 %v962_v1, %v961_v8  ;;  %v1250_v8 = vld [vmem:[#allocation5 + $0x120] sm:$0xff] }
 0x682   :  { %2158 = vmatmul.msk.f32.gmra.mxu0 %vm155_vm4, %v964_v10 }
 0x6f7   :  { %v993_v23 = vpop.f32.mrf.mxu0 }
 0x6f8   :  { %v994_v24 = vadd.f32 %v993_v23, %v969_v48 }
 0x6fa   :  { %v1001_v25 = vmul.f32 0.044715, %v994_v24  ;;  %v999_v36 = vmul.f32 0.5, %v994_v24 }
 0x6fc   :  { %v1003_v27 = vmul.f32 %v1001_v25, %v994_v24 }
 0x6fe   :  { %v1005_v28 = vmul.f32 %v1003_v27, %v994_v24 }
 0x6ff   :  { %v996_v29 = vpop.f32.mrf.mxu0 }
 0x700   :  { %v1007_v30 = vadd.f32 %v1005_v28, %v994_v24  ;;  %v997_v61 = vadd.f32 %v996_v29, %v969_v48  ;;  %v1102_v28 = vperm.slane %v2713_v45, 5 }
 0x702   :  { %v1009_v32 = vmul.f32 0.7978846, %v1007_v30  ;;  %v1002_v33 = vmul.f32 0.044715, %v997_v61  ;;  %v1000_v38 = vmul.f32 0.5, %v997_v61 }
 0x704   :  { %2274 = vtanh.f32 %v1009_v32  ;;  %v1004_v35 = vmul.f32 %v1002_v33, %v997_v61 }
 0x706   :  { %v1006_v39 = vmul.f32 %v1004_v35, %v997_v61 }
 0x708   :  { %v1008_v14 = vadd.f32 %v1006_v39, %v997_v61  ;;  %v1105_v61 = vperm.slane %v2713_v45, 6 }
 0x70a   :  { %v2275_v26 = vpop.eup %2274  ;;  %v1010_v41 = vmul.f32 0.7978846, %v1008_v14 }
 0x70b   :  { %v1013_v34 = vadd.f32 1.0, %v2275_v26 }
 0x70c   :  { %2276 = vtanh.f32 %v1010_v41 }
 0x70d   :  { %v1015_v21 = vmul.f32 %v1013_v34, %v999_v36 }
 0x70f   :  { %2159 = vmatmul.msk.f32.vlgmr.msrb.gmra.mxu1 %vm1026_vm8, %v1015_v21  ;;  %v1281_v21 = vld [vmem:[#allocation5 + $0x158] sm:$0xff] }
 0x712   :  { %v2277_v31 = vpop.eup %2276 }
 0x713   :  { %v1014_v44 = vadd.f32 1.0, %v2277_v31  ;;  %v2162_v31 = vld [vmem:[%s3027_s5 + $0x4] sm:$0xf] }
 0x715   :  { %v1016_v46 = vmul.f32 %v1014_v44, %v1000_v38  ;;  %v1280_v38 = vld [vmem:[#allocation5 + $0x150] sm:$0xff]  ;;  %v1279_v44 = vld [vmem:[#allocation5 + $0x148] sm:$0xff] }
 0x717   :  { %2160 = vmatmul.msk.f32.gmra.mxu1 %vm1026_vm8, %v1016_v46  ;;  %v1278_v46 = vld [vmem:[#allocation5 + $0x140] sm:$0xff] }
 0x78c   :  { %v1050_v43 = vpop.f32.mrf.mxu1 }
 0x78d   :  { %v1051_v49 = vadd.f32 %v1050_v43, %v1025_v47  ;;  %v1388_v43 = vld [vmem:[#allocation5 + $0x170] sm:$0xff] }
 0x78f   :  { %v1056_v50 = vadd.f32 %v1051_v49, %v963_v42  ;;  %v1252_v42 = vld [vmem:[#allocation5 + $0x130] sm:$0xff]  ;;  %v1387_v49 = vld [vmem:[#allocation5 + $0x168] sm:$0xff] }
 0x790   :  { %1267 = vmatpush.msra.mxu1 %v1252_v42 }
 0x791   :  { %v1058_v51 = vsel %vm155_vm4, %v1056_v50, 0.0 }
 0x792   :  { %1059 = vadd.xlane.f32.xlu2 %v1058_v51  ;;  %1268 = vmatpush.msra.mxu1 %v1251_v6 }
 0x794   :  { %v1053_v52 = vpop.f32.mrf.mxu1  ;;  %1269 = vmatpush.msra.mxu1 %v1250_v8 }
 0x795   :  { %v1054_v53 = vadd.f32 %v1053_v52, %v1025_v47  ;;  %v1389_v47 = vld [vmem:[#allocation5 + $0x178] sm:$0xff] }
 0x797   :  { %v1057_v54 = vadd.f32 %v1054_v53, %v964_v10  ;;  %v1475_v53 = vld [vmem:[#allocation5 + $0x198] sm:$0xff] }
 0x799   :  { %v1061_v55 = vsel %vm155_vm4, %v1057_v54, 0.0 }
 0x79a   :  { %1062 = vadd.xlane.f32.xlu1 %v1061_v55  ;;  %v1473_v55 = vld [vmem:[#allocation5 + $0x188] sm:$0xff] }
 0x805   :  { %v1060_v56 = vpop.xlane.xlu2 %1059 }
 0x806   :  { %v1064_v57 = vmul.f32 %v1060_v56, %v2537_v37 }
 0x808   :  { %v1066_v58 = vsub.f32 %v1056_v50, %v1064_v57  ;;  %v1386_v50 = vld [vmem:[#allocation5 + $0x160] sm:$0xff] }
 0x809   :  { %v1472_v57 = vld [vmem:[#allocation5 + $0x180] sm:$0xff] }
 0x80a   :  { %v1068_v40 = vmul.f32 %v1066_v58, %v1066_v58 }
 0x80c   :  { %v1070_v59 = vsel %vm155_vm4, %v1068_v40, 0.0 }
 0x80d   :  { %v1063_v60 = vpop.xlane.xlu1 %1062  ;;  %1071 = vadd.xlane.f32.xlu1 %v1070_v59  ;;  %v1642_v59 = vld [vmem:[#allocation5 + $0x1d8] sm:$0xff] }
 0x80e   :  { %v1065_v62 = vmul.f32 %v1063_v60, %v2537_v37 }
 0x810   :  { %v1067_v63 = vsub.f32 %v1057_v54, %v1065_v62  ;;  %v1474_v54 = vld [vmem:[#allocation5 + $0x190] sm:$0xff] }
 0x811   :  { %v1641_v62 = vld [vmem:[#allocation5 + $0x1d0] sm:$0xff] }
 0x812   :  { %v1069_v0 = vmul.f32 %v1067_v63, %v1067_v63 }
 0x814   :  { %v1073_v1 = vsel %vm155_vm4, %v1069_v0, 0.0  ;;  %v1639_v0 = vld [vmem:[#allocation5 + $0x1c0] sm:$0xff] }
 0x815   :  { %1074 = vadd.xlane.f32.xlu0 %v1073_v1 }
 0x880   :  { %v1072_v10 = vpop.xlane.xlu1 %1071 }
 0x881   :  { %v1076_v12 = vmul.f32 %v1072_v10, %v2537_v37 }
 0x883   :  { %v1078_v13 = vadd.f32 1e-12, %v1076_v12  ;;  %v2328_v12 = vld [vmem:[%s3023_s1] sm:$0xff] }
 0x885   :  { %2278 = vrsqrt.f32 %v1078_v13  ;;  %vm1086_vm10 = vweird.f32 %v1078_v13 }
 0x888   :  { %v1075_v15 = vpop.xlane.xlu0 %1074 }
 0x889   :  { %v1077_v18 = vmul.f32 %v1075_v15, %v2537_v37 }
 0x88b   :  { %v2279_v20 = vpop.eup %2278  ;;  %v1079_v11 = vadd.f32 1e-12, %v1077_v18 }
 0x88c   :  { %v1081_v22 = vmul.f32 %v2279_v20, %v1078_v13  ;;  %vm1087_vm9 = vweird.f32 %v2279_v20 }
 0x88d   :  { %2280 = vrsqrt.f32 %v1079_v11  ;;  %vm1088_vm11 = vmor %vm1086_vm10, %vm1087_vm9  ;;  %vm1096_vm14 = vweird.f32 %v1079_v11 }
 0x88e   :  { %v1082_v9 = vmul.f32 %v2279_v20, %v1081_v22 }
 0x890   :  { %v1083_v48 = vmul.f32 0.5, %v1082_v9 }
 0x892   :  { %v1084_v23 = vsub.f32 1.5, %v1083_v48 }
 0x893   :  { %v2281_v24 = vpop.eup %2280 }
 0x894   :  { %v1085_v25 = vmul.f32 %v2279_v20, %v1084_v23  ;;  %v1091_v27 = vmul.f32 %v2281_v24, %v1079_v11  ;;  %vm1097_vm13 = vweird.f32 %v2281_v24  ;;  %v2329_v11 = vld [vmem:[%s3023_s1 + $0x8] sm:$0xff] }
 0x895   :  { %vm1098_vm15 = vmor %vm1096_vm14, %vm1097_vm13 }
 0x896   :  { %v1089_v29 = vsel %vm1088_vm11, %v2279_v20, %v1085_v25  ;;  %v1092_v30 = vmul.f32 %v2281_v24, %v1091_v27 }
 0x897   :  { %v1100_v32 = vmul.f32 %v1089_v29, %v1066_v58 }
 0x898   :  { %v1093_v33 = vmul.f32 0.5, %v1092_v30 }
 0x899   :  { %v1103_v35 = vmul.f32 %v1102_v28, %v1100_v32 }
 0x89a   :  { %v1094_v39 = vsub.f32 1.5, %v1093_v33 }
 0x89b   :  { %v2770_v14 = vadd.f32 %v1105_v61, %v1103_v35 }
 0x89c   :  { %v1095_v26 = vmul.f32 %v2281_v24, %v1094_v39 }
 0x89d   :  { %2166 = vmatmul.msk.f32.vlgmr.msrb.gmra.mxu3 %vm155_vm4, %v2770_v14  ;;  %2172 = vmatmul.msk.f32.vlgmr.msra.gmra.mxu1 %vm155_vm4, %v2770_v14 }
 0x89e   :  { %v1099_v41 = vsel %vm1098_vm15, %v2281_v24, %v1095_v26 }
 0x89f   :  { %v1101_v36 = vmul.f32 %v1099_v41, %v1067_v63  ;;  %v1640_v63 = vld [vmem:[#allocation5 + $0x1c8] sm:$0xff] }
 0x8a1   :  { %v1104_v34 = vmul.f32 %v1102_v28, %v1101_v36 }
 0x8a3   :  { %v2776_v45 = vadd.f32 %v1105_v61, %v1104_v34 }
 0x8a5   :  { %2163 = vmatpush.xpose.msk.msrb.mxu2 %vm155_vm4, %v2776_v45  ;;  %2167 = vmatmul.msk.f32.gmra.mxu3 %vm155_vm4, %v2776_v45 }
 0x8a6   :  { %2168 = vmatpush.xpose.msk.msra.mxu0 %vm155_vm4, %v2776_v45  ;;  %2173 = vmatmul.msk.f32.gmra.mxu1 %vm155_vm4, %v2776_v45 }
 0x8a7   :  { %2176 = vmatpush.xpose.msk.msra.mxu3 %vm155_vm4, %v2776_v45 }
 0x8a9   :  { %2164 = vmatpush.xpose.msk.msrb.mxu2 %vm155_vm4, %v2770_v14 }
 0x8aa   :  { %2169 = vmatpush.xpose.msk.msra.mxu0 %vm155_vm4, %v2770_v14 }
 0x8ab   :  { %2177 = vmatpush.xpose.msk.msra.mxu3 %vm155_vm4, %v2770_v14 }
 0x8ac   :  { %2165 = vmatmul.msk.f32.vlgmr.msrb.gmra.mxu2 %vm155_vm4, %v2162_v31 }
 0x8ad   :  { %1294 = vmatpush.msra.mxu2 %v1281_v21 }
 0x8ae   :  { %1402 = vmatpush.msrb.mxu0 %v1389_v47 }
 0x8af   :  { %1295 = vmatpush.msra.mxu2 %v1280_v38  ;;  %1488 = vmatpush.msrb.mxu3 %v1475_v53 }
 0x8b0   :  { %1403 = vmatpush.msrb.mxu0 %v1388_v43 }
 0x8b1   :  { %1296 = vmatpush.msra.mxu2 %v1279_v44  ;;  %1489 = vmatpush.msrb.mxu3 %v1474_v54 }
 0x8b2   :  { %1404 = vmatpush.msrb.mxu0 %v1387_v49 }
 0x8b3   :  { %1297 = vmatpush.msra.mxu2 %v1278_v46  ;;  %1490 = vmatpush.msrb.mxu3 %v1473_v55 }
 0x8b4   :  { %2174 = vmatmul.msk.f32.vlgmr.msra.gmra.mxu2 %vm155_vm4, %v2770_v14  ;;  %1405 = vmatpush.msrb.mxu0 %v1386_v50 }
 0x8b5   :  { %1491 = vmatpush.msrb.mxu3 %v1472_v57 }
 0x8bc   :  { %2175 = vmatmul.msk.f32.gmra.mxu2 %vm155_vm4, %v2776_v45 }
 0x91a   :  { %v1271_v51 = vpop.f32.mrf.mxu1 }
 0x920   :  { %v1163_v52 = vpop.f32.mrf.mxu3 }
 0x921   :  { %2170 = vmatmul.msk.f32.vlgmr.msra.gmra.mxu0 %vm155_vm4, %v1163_v52 }
 0x922   :  { %2188 = vmatpush.xpose.msk.msra.mxu0 %vm155_vm4, %v2776_v45 }
 0x923   :  { %v1274_v56 = vpop.f32.mrf.mxu1 }
 0x924   :  { %1462 = vmatpush.msrb.mxu2 %v1274_v56 }
 0x926   :  { %1463 = vmatpush.msrb.mxu2 %v1271_v51  ;;  %2189 = vmatpush.xpose.msk.msra.mxu0 %vm155_vm4, %v2770_v14 }
 0x928   :  { %v1166_v58 = vpop.f32.mrf.mxu3 }
 0x929   :  { %2171 = vmatmul.msk.f32.gmra.mxu0 %vm155_vm4, %v1166_v58 }
 0x92f   :  { %v2808_v40 = vpop.f32.mrf.mxu2 }
 0x930   :  { %v1169_v3 = vperm.slane %v2808_v40, 0  ;;  %v1305_v7 = vperm.slane %v2808_v40, 1  ;;  %v1499_v21 = vperm.slane %v2808_v40, 2  ;;  %v1666_v56 = vperm.slane %v2808_v40, 3 }
 0x931   :  { %2180 = vmatmul.msk.f32.vlgmr.msrb.gmra.mxu0 %vm155_vm4, %v2770_v14 }
 0x932   :  { %2198 = vmatpush.xpose.msk.msrb.mxu0 %vm155_vm4, %v2776_v45 }
 0x936   :  { %2199 = vmatpush.xpose.msk.msrb.mxu0 %vm155_vm4, %v2770_v14 }
 0x937   :  { %v1299_v60 = vpop.f32.mrf.mxu2 }
 0x938   :  { %2178 = vmatmul.msk.f32.vlgmr.msra.gmra.mxu3 %vm155_vm4, %v1299_v60 }
 0x939   :  { %2181 = vmatmul.msk.f32.gmra.mxu0 %vm155_vm4, %v2776_v45  ;;  %1655 = vmatpush.msra.mxu3 %v1642_v59 }
 0x93b   :  { %1656 = vmatpush.msra.mxu3 %v1641_v62 }
 0x93d   :  { %1657 = vmatpush.msra.mxu3 %v1640_v63 }
 0x93f   :  { %v1302_v1 = vpop.f32.mrf.mxu2  ;;  %1658 = vmatpush.msra.mxu3 %v1639_v0 }
 0x940   :  { %2179 = vmatmul.msk.f32.gmra.mxu3 %vm155_vm4, %v1302_v1 }
 0x948   :  { %2186 = vmatmul.msk.f32.vlgmr.msrb.gmra.mxu3 %vm155_vm4, %v2770_v14 }
 0x950   :  { %2187 = vmatmul.msk.f32.gmra.mxu3 %vm155_vm4, %v2776_v45 }
 0x958   :  { %2196 = vmatmul.msk.f32.vlgmr.msra.gmra.mxu3 %vm155_vm4, %v2770_v14 }
 0x960   :  { %2197 = vmatmul.msk.f32.gmra.mxu3 %vm155_vm4, %v2776_v45 }
 0x99e   :  { %v1193_v2 = vpop.f32.mrf.mxu0 }
 0x99f   :  { %v1194_v9 = vadd.f32 %v1193_v2, %v1169_v3 }
 0x9a1   :  { %v1199_v24 = vadd.f32 %v2328_v12, %v1194_v9 }
 0x9a3   :  { %v1201_v25 = vsel %vm305_vm12, %v1199_v24, -inf }
 0x9a6   :  { %v1196_v4 = vpop.f32.mrf.mxu0 }
 0x9a7   :  { %v1197_v42 = vadd.f32 %v1196_v4, %v1169_v3  ;;  %v1583_v3 = vld [vmem:[#allocation5 + $0x1b8] sm:$0xff] }
 0x9a9   :  { %v1200_v36 = vadd.f32 %v2329_v11, %v1197_v42  ;;  %v1582_v42 = vld [vmem:[#allocation5 + $0x1b0] sm:$0xff] }
 0x9ab   :  { %v1204_v38 = vsel %vm305_vm12, %v1200_v36, -inf }
 0x9ae   :  { %v1407_v5 = vpop.f32.mrf.mxu0 }
 0x9b6   :  { %v1410_v6 = vpop.f32.mrf.mxu0 }
 0x9b7   :  { %1433 = vmatpush.msrb.mxu1 %v1410_v6  ;;  %v1580_v6 = vld [vmem:[#allocation5 + $0x1a0] sm:$0xff] }
 0x9b9   :  { %1434 = vmatpush.msrb.mxu1 %v1407_v5  ;;  %v1581_v5 = vld [vmem:[#allocation5 + $0x1a8] sm:$0xff] }
 0x9bb   :  { %v1329_v8 = vpop.f32.mrf.mxu3  ;;  %1596 = vmatpush.msra.mxu1 %v1583_v3 }
 0x9bc   :  { %v1330_v10 = vadd.f32 %v1329_v8, %v1305_v7 }
 0x9bd   :  { %1597 = vmatpush.msra.mxu1 %v1582_v42 }
 0x9be   :  { %v1335_v13 = vadd.f32 %v2328_v12, %v1330_v10 }
 0x9bf   :  { %1598 = vmatpush.msra.mxu1 %v1581_v5 }
 0x9c0   :  { %v1337_v15 = vsel %vm305_vm12, %v1335_v13, -inf }
 0x9c1   :  { %1338 = vmax.xlane.f32.xlu2 %v1337_v15  ;;  %1599 = vmatpush.msra.mxu1 %v1580_v6 }
 0x9c3   :  { %v1332_v18 = vpop.f32.mrf.mxu3 }
 0x9c4   :  { %v1333_v20 = vadd.f32 %v1332_v18, %v1305_v7 }
 0x9c6   :  { %v1336_v22 = vadd.f32 %v2329_v11, %v1333_v20 }
 0x9c8   :  { %v1340_v48 = vsel %vm305_vm12, %v1336_v22, -inf }
 0x9c9   :  { %1341 = vmax.xlane.f32.xlu0 %v1340_v48 }
 0x9cb   :  { %v1493_v23 = vpop.f32.mrf.mxu3 }
 0x9cc   :  { %2190 = vmatmul.msk.f32.vlgmr.msra.gmra.mxu0 %vm155_vm4, %v1493_v23 }
 0x9d1   :  { %1202 = vmax.xlane.f32.xlu0 %v1201_v25 }
 0x9d3   :  { %v1496_v27 = vpop.f32.mrf.mxu3 }
 0x9d4   :  { %2191 = vmatmul.msk.f32.gmra.mxu0 %vm155_vm4, %v1496_v27 }
 0x9db   :  { %v1660_v28 = vpop.f32.mrf.mxu3 }
 0x9dc   :  { %2200 = vmatmul.msk.f32.vlgmr.msrb.gmra.mxu0 %vm155_vm4, %v1660_v28 }
 0x9e3   :  { %v1663_v29 = vpop.f32.mrf.mxu3 }
 0x9e4   :  { %2201 = vmatmul.msk.f32.gmra.mxu0 %vm155_vm4, %v1663_v29 }
 0xa34   :  { %v1339_v30 = vpop.xlane.xlu2 %1338 }
 0xa35   :  { %v1343_v61 = vsub.f32 %v1335_v13, %v1339_v30 }
 0xa37   :  { %v1345_v32 = vmul.f32 1.442695, %v1343_v61 }
 0xa39   :  { %2282 = vpow2.f32 %v1345_v32  ;;  %v1750_v32 = vld [vmem:[#allocation5 + $0x1f8] sm:$0xff] }
 0xa3c   :  { %v1342_v33 = vpop.xlane.xlu0 %1341 }
 0xa3d   :  { %v1344_v35 = vsub.f32 %v1336_v22, %v1342_v33 }
 0xa3f   :  { %v2843_v39 = vpop.eup %2282  ;;  %v1347_v26 = vmul.f32 1.442695, %v1344_v35 }
 0xa40   :  { %v1349_v41 = vsel %vm305_vm12, %v2843_v39, 0.0 }
 0xa41   :  { %2284 = vpow2.f32 %v1347_v26  ;;  %1350 = vadd.xlane.f32.xlu1 %v1349_v41 }
 0xa44   :  { %v1203_v46 = vpop.xlane.xlu0 %1202 }
 0xa45   :  { %v1207_v49 = vsub.f32 %v1199_v24, %v1203_v46 }
 0xa47   :  { %v2847_v34 = vpop.eup %2284  ;;  %v1209_v51 = vmul.f32 1.442695, %v1207_v49  ;;  %v1747_v49 = vld [vmem:[#allocation5 + $0x1e0] sm:$0xff] }
 0xa48   :  { %v1352_v31 = vsel %vm305_vm12, %v2847_v34, 0.0 }
 0xa49   :  { %v1523_v44 = vpop.f32.mrf.mxu0  ;;  %1353 = vadd.xlane.f32.xlu2 %v1352_v31  ;;  %1205 = vmax.xlane.f32.xlu1 %v1204_v38  ;;  %2286 = vpow2.f32 %v1209_v51  ;;  %v1749_v31 = vld [vmem:[#allocation5 + $0x1f0] sm:$0xff] }
 0xa4a   :  { %v1524_v47 = vadd.f32 %v1523_v44, %v1499_v21  ;;  %v1748_v44 = vld [vmem:[#allocation5 + $0x1e8] sm:$0xff] }
 0xa4c   :  { %v2853_v43 = vadd.f32 %v2328_v12, %v1524_v47 }
 0xa4e   :  { %v1531_v50 = vsel %vm305_vm12, %v2853_v43, -inf }
 0xa4f   :  { %v2862_v59 = vpop.eup %2286 }
 0xa50   :  { %v1213_v63 = vsel %vm305_vm12, %v2862_v59, 0.0 }
 0xa51   :  { %v1526_v52 = vpop.f32.mrf.mxu0  ;;  %1532 = vmax.xlane.f32.xlu2 %v1531_v50 }
 0xa52   :  { %v1527_v53 = vadd.f32 %v1526_v52, %v1499_v21 }
 0xa54   :  { %v2857_v54 = vadd.f32 %v2329_v11, %v1527_v53 }
 0xa56   :  { %v1534_v55 = vsel %vm305_vm12, %v2857_v54, -inf }
 0xa57   :  { %1535 = vmax.xlane.f32.xlu0 %v1534_v55 }
 0xa59   :  { %v1690_v57 = vpop.f32.mrf.mxu0 }
 0xa5a   :  { %v1691_v58 = vadd.f32 %v1690_v57, %v1666_v56 }
 0xa5c   :  { %v2864_v60 = vadd.f32 %v2328_v12, %v1691_v58 }
 0xa5e   :  { %v1698_v62 = vsel %vm305_vm12, %v2864_v60, -inf }
 0xa5f   :  { %1699 = vmax.xlane.f32.xlu1 %v1698_v62  ;;  %1214 = vadd.xlane.f32.xlu0 %v1213_v63 }
 0xa61   :  { %v1693_v0 = vpop.f32.mrf.mxu0 }
 0xa62   :  { %v1694_v1 = vadd.f32 %v1693_v0, %v1666_v56 }
 0xa64   :  { %v2870_v2 = vadd.f32 %v2329_v11, %v1694_v1 }
 0xa66   :  { %v1701_v40 = vsel %vm305_vm12, %v2870_v2, -inf }
 0xa67   :  { %1702 = vmax.xlane.f32.xlu2 %v1701_v40 }
 0xab4   :  { %v1351_v4 = vpop.xlane.xlu1 %1350 }
 0xab5   :  { %2288 = vrcp.f32 %v1351_v4  ;;  %v1366_v18 = vand.u32 2147483648, %v1351_v4  ;;  %v1364_v22 = vand.u32 2147483647, %v1351_v4  ;;  %vm1360_vm1 = vweird.f32 %v1351_v4 }
 0xab7   :  { %v1367_v23 = vor.u32 1.1754944e-38, %v1366_v18  ;;  %vm1365_vm3 = vcmp.eq.f32.partialorder %v1364_v22, 8.507059e+37 }
 0xabb   :  { %v2289_v7 = vpop.eup %2288 }
 0xabc   :  { %v1356_v8 = vmul.f32 %v2289_v7, %v1351_v4  ;;  %v1354_v10 = vpop.xlane.xlu2 %1353  ;;  %v1206_v12 = vpop.xlane.xlu1 %1205  ;;  %vm1361_vm0 = vweird.f32 %v2289_v7 }
 0xabd   :  { %2290 = vrcp.f32 %v1354_v10  ;;  %v1208_v13 = vsub.f32 %v1200_v36, %v1206_v12  ;;  %vm1362_vm2 = vmor %vm1360_vm1, %vm1361_vm0  ;;  %v1381_v35 = vand.u32 2147483648, %v1354_v10  ;;  %v1379_v21 = vand.u32 2147483647, %v1354_v10 }
 0xabe   :  { %v1357_v15 = vsub.f32 1.0, %v1356_v8  ;;  %vm1375_vm6 = vweird.f32 %v1354_v10 }
 0xabf   :  { %v1211_v20 = vmul.f32 1.442695, %v1208_v13  ;;  %v1382_v46 = vor.u32 1.1754944e-38, %v1381_v35  ;;  %vm1380_vm9 = vcmp.eq.f32.partialorder %v1379_v21, 8.507059e+37 }
 0xac0   :  { %v1358_v11 = vmul.f32 %v2289_v7, %v1357_v15 }
 0xac1   :  { %2292 = vpow2.f32 %v1211_v20 }
 0xac2   :  { %v1359_v9 = vadd.f32 %v2289_v7, %v1358_v11 }
 0xac3   :  { %v2291_v48 = vpop.eup %2290 }
 0xac4   :  { %v1363_v24 = vsel %vm1362_vm2, %v2289_v7, %v1359_v9  ;;  %v1371_v25 = vmul.f32 %v2291_v48, %v1354_v10  ;;  %v1533_v27 = vpop.xlane.xlu2 %1532  ;;  %vm1376_vm5 = vweird.f32 %v2291_v48 }
 0xac5   :  { %v1368_v28 = vsel %vm1365_vm3, %v1367_v23, %v1363_v24  ;;  %v1537_v29 = vsub.f32 %v2853_v43, %v1533_v27  ;;  %vm1377_vm7 = vmor %vm1375_vm6, %vm1376_vm5 }
 0xac6   :  { %v1372_v30 = vsub.f32 1.0, %v1371_v25  ;;  %v1369_v61 = vmul.f32 %v2843_v39, %v1368_v28 }
 0xac7   :  { %v2876_v33 = vpop.eup %2292  ;;  %v1539_v26 = vmul.f32 1.442695, %v1537_v29 }
 0xac8   :  { %v1373_v41 = vmul.f32 %v2291_v48, %v1372_v30  ;;  %2182 = vmatmul.msk.f32.vlgmr.msrb.gmra.mxu1 %vm305_vm12, %v1369_v61  ;;  %v1216_v36 = vsel %vm305_vm12, %v2876_v33, 0.0 }
 0xac9   :  { %2294 = vpow2.f32 %v1539_v26  ;;  %1217 = vadd.xlane.f32.xlu1 %v1216_v36  ;;  %1763 = vmatpush.msrb.mxu1 %v1750_v32 }
 0xaca   :  { %v1536_v38 = vpop.xlane.xlu0 %1535  ;;  %v1374_v39 = vadd.f32 %v2291_v48, %v1373_v41 }
 0xacb   :  { %v1538_v47 = vsub.f32 %v2857_v54, %v1536_v38  ;;  %1764 = vmatpush.msrb.mxu1 %v1749_v31 }
 0xacc   :  { %v1378_v43 = vsel %vm1377_vm7, %v2291_v48, %v1374_v39 }
 0xacd   :  { %v1541_v50 = vmul.f32 1.442695, %v1538_v47  ;;  %v1383_v51 = vsel %vm1380_vm9, %v1382_v46, %v1378_v43  ;;  %1765 = vmatpush.msrb.mxu1 %v1748_v44 }
 0xace   :  { %v1384_v52 = vmul.f32 %v2847_v34, %v1383_v51 }
 0xacf   :  { %v2883_v53 = vpop.eup %2294  ;;  %2296 = vpow2.f32 %v1541_v50  ;;  %1766 = vmatpush.msrb.mxu1 %v1747_v49 }
 0xad0   :  { %2183 = vmatmul.msk.f32.gmra.mxu1 %vm305_vm12, %v1384_v52  ;;  %v1543_v55 = vsel %vm305_vm12, %v2883_v53, 0.0 }
 0xad1   :  { %1544 = vadd.xlane.f32.xlu2 %v1543_v55 }
 0xad2   :  { %v1700_v54 = vpop.xlane.xlu1 %1699  ;;  %v1215_v56 = vpop.xlane.xlu0 %1214 }
 0xad3   :  { %v1704_v57 = vsub.f32 %v2864_v60, %v1700_v54  ;;  %2298 = vrcp.f32 %v1215_v56  ;;  %v1230_v60 = vand.u32 2147483648, %v1215_v56  ;;  %v1228_v6 = vand.u32 2147483647, %v1215_v56 }
 0xad4   :  { %vm1224_vm11 = vweird.f32 %v1215_v56 }
 0xad5   :  { %v2889_v58 = vpop.eup %2296  ;;  %v1706_v62 = vmul.f32 1.442695, %v1704_v57  ;;  %vm1229_vm14 = vcmp.eq.f32.partialorder %v1228_v6, 8.507059e+37 }
 0xad6   :  { %v1546_v34 = vsel %vm305_vm12, %v2889_v58, 0.0 }
 0xad7   :  { %2300 = vpow2.f32 %v1706_v62  ;;  %1547 = vadd.xlane.f32.xlu0 %v1546_v34 }
 0xad8   :  { %2192 = vmatmul.msk.f32.vlgmr.msra.gmra.mxu1 %vm155_vm4, %v2770_v14 }
 0xad9   :  { %v2299_v63 = vpop.eup %2298 }
 0xada   :  { %v1220_v0 = vmul.f32 %v2299_v63, %v1215_v56  ;;  %v1703_v1 = vpop.xlane.xlu2 %1702  ;;  %vm1225_vm10 = vweird.f32 %v2299_v63 }
 0xadb   :  { %v1705_v40 = vsub.f32 %v2870_v2, %v1703_v1  ;;  %vm1226_vm13 = vmor %vm1224_vm11, %vm1225_vm10  ;;  %v1231_v2 = vor.u32 1.1754944e-38, %v1230_v60 }
 0xadc   :  { %v1221_v3 = vsub.f32 1.0, %v1220_v0 }
 0xadd   :  { %v2896_v4 = vpop.eup %2300  ;;  %v1708_v42 = vmul.f32 1.442695, %v1705_v40 }
 0xade   :  { %v1222_v5 = vmul.f32 %v2299_v63, %v1221_v3  ;;  %v1710_v7 = vsel %vm305_vm12, %v2896_v4, 0.0 }
 0xadf   :  { %2302 = vpow2.f32 %v1708_v42  ;;  %1711 = vadd.xlane.f32.xlu1 %v1710_v7 }
 0xae0   :  { %v1223_v8 = vadd.f32 %v2299_v63, %v1222_v5  ;;  %2193 = vmatmul.msk.f32.gmra.mxu1 %vm155_vm4, %v2776_v45 }
 0xae2   :  { %v1227_v10 = vsel %vm1226_vm13, %v2299_v63, %v1223_v8 }
 0xae3   :  { %v1232_v12 = vsel %vm1229_vm14, %v1231_v2, %v1227_v10 }
 0xae4   :  { %v1233_v13 = vmul.f32 %v2862_v59, %v1232_v12 }
 0xae5   :  { %v2903_v15 = vpop.eup %2302 }
 0xae6   :  { %2184 = vmatmul.msk.f32.vlgmr.msrb.gmra.mxu2 %vm305_vm12, %v1233_v13  ;;  %v1713_v18 = vsel %vm305_vm12, %v2903_v15, 0.0 }
 0xae7   :  { %1714 = vadd.xlane.f32.xlu2 %v1713_v18 }
 0xae8   :  { %2202 = vmatmul.msk.f32.vlgmr.msrb.gmra.mxu1 %vm155_vm4, %v2770_v14 }
 0xaf0   :  { %2203 = vmatmul.msk.f32.gmra.mxu1 %vm155_vm4, %v2776_v45 }
 0xb3c   :  { %v1218_v20 = vpop.xlane.xlu1 %1217 }
 0xb3d   :  { %2304 = vrcp.f32 %v1218_v20  ;;  %v1245_v23 = vand.u32 2147483648, %v1218_v20  ;;  %v1243_v25 = vand.u32 2147483647, %v1218_v20  ;;  %vm1239_vm0 = vweird.f32 %v1218_v20 }
 0xb3f   :  { %v1246_v30 = vor.u32 1.1754944e-38, %v1245_v23  ;;  %vm1244_vm2 = vcmp.eq.f32.partialorder %v1243_v25, 8.507059e+37 }
 0xb43   :  { %v2305_v11 = vpop.eup %2304 }
 0xb44   :  { %v1235_v22 = vmul.f32 %v2305_v11, %v1218_v20  ;;  %v1545_v9 = vpop.xlane.xlu2 %1544  ;;  %vm1240_vm15 = vweird.f32 %v2305_v11 }
 0xb45   :  { %2306 = vrcp.f32 %v1545_v9  ;;  %v2912_v59 = vpop.f32.mrf.mxu1  ;;  %vm1241_vm1 = vmor %vm1239_vm0, %vm1240_vm15  ;;  %v1560_v43 = vand.u32 2147483648, %v1545_v9  ;;  %vm1554_vm5 = vweird.f32 %v1545_v9  ;;  %v1558_v49 = vand.u32 2147483647, %v1545_v9 }
 0xb46   :  { %v1236_v48 = vsub.f32 1.0, %v1235_v22 }
 0xb47   :  { %v1561_v55 = vor.u32 1.1754944e-38, %v1560_v43  ;;  %vm1559_vm7 = vcmp.eq.f32.partialorder %v1558_v49, 8.507059e+37 }
 0xb48   :  { %v1237_v24 = vmul.f32 %v2305_v11, %v1236_v48 }
 0xb4a   :  { %v1548_v27 = vpop.xlane.xlu0 %1547  ;;  %v1238_v28 = vadd.f32 %v2305_v11, %v1237_v24 }
 0xb4b   :  { %v2307_v29 = vpop.eup %2306  ;;  %2308 = vrcp.f32 %v1548_v27  ;;  %v1575_v63 = vand.u32 2147483648, %v1548_v27  ;;  %vm1569_vm10 = vweird.f32 %v1548_v27  ;;  %v1573_v1 = vand.u32 2147483647, %v1548_v27 }
 0xb4c   :  { %v1550_v61 = vmul.f32 %v2307_v29, %v1545_v9  ;;  %v1242_v32 = vsel %vm1241_vm1, %v2305_v11, %v1238_v28  ;;  %vm1555_vm3 = vweird.f32 %v2307_v29 }
 0xb4d   :  { %v2914_v35 = vpop.f32.mrf.mxu1  ;;  %v1247_v26 = vsel %vm1244_vm2, %v1246_v30, %v1242_v32  ;;  %vm1556_vm6 = vmor %vm1554_vm5, %vm1555_vm3  ;;  %v1576_v42 = vor.u32 1.1754944e-38, %v1575_v63  ;;  %vm1574_vm13 = vcmp.eq.f32.partialorder %v1573_v1, 8.507059e+37  ;;  %v1862_v63 = vld [vmem:[#allocation7 + $0x28] sm:$0xff] }
 0xb4e   :  { %v1551_v41 = vsub.f32 1.0, %v1550_v61  ;;  %v1248_v36 = vmul.f32 %v2876_v33, %v1247_v26 }
 0xb50   :  { %2185 = vmatmul.msk.f32.gmra.mxu2 %vm305_vm12, %v1248_v36  ;;  %v1552_v31 = vmul.f32 %v2307_v29, %v1551_v41 }
 0xb51   :  { %v2309_v21 = vpop.eup %2308 }
 0xb52   :  { %v1565_v38 = vmul.f32 %v2309_v21, %v1548_v27  ;;  %v1712_v39 = vpop.xlane.xlu1 %1711  ;;  %v1553_v44 = vadd.f32 %v2307_v29, %v1552_v31  ;;  %vm1570_vm9 = vweird.f32 %v2309_v21 }
 0xb53   :  { %2310 = vrcp.f32 %v1712_v39  ;;  %vm1571_vm11 = vmor %vm1569_vm10, %vm1570_vm9  ;;  %v1727_v10 = vand.u32 2147483648, %v1712_v39  ;;  %vm1721_vm15 = vweird.f32 %v1712_v39  ;;  %v1725_v12 = vand.u32 2147483647, %v1712_v39 }
 0xb54   :  { %v1566_v46 = vsub.f32 1.0, %v1565_v38  ;;  %v1557_v51 = vsel %vm1556_vm6, %v2307_v29, %v1553_v44 }
 0xb55   :  { %v1601_v47 = vpop.f32.mrf.mxu1  ;;  %v1562_v56 = vsel %vm1559_vm7, %v1561_v55, %v1557_v51  ;;  %v1728_v20 = vor.u32 1.1754944e-38, %v1727_v10  ;;  %vm1726_vm1 = vcmp.eq.f32.partialorder %v1725_v12, 8.507059e+37 }
 0xb56   :  { %v1567_v52 = vmul.f32 %v2309_v21, %v1566_v46  ;;  %v1563_v0 = vmul.f32 %v2883_v53, %v1562_v56 }
 0xb58   :  { %v1568_v34 = vadd.f32 %v2309_v21, %v1567_v52 }
 0xb59   :  { %v2311_v50 = vpop.eup %2310 }
 0xb5a   :  { %v1717_v33 = vmul.f32 %v2311_v50, %v1712_v39  ;;  %v1715_v54 = vpop.xlane.xlu2 %1714  ;;  %v1572_v60 = vsel %vm1571_vm11, %v2309_v21, %v1568_v34  ;;  %vm1722_vm14 = vweird.f32 %v2311_v50  ;;  %v1863_v34 = vld [vmem:[#allocation7 + $0x30] sm:$0xff] }
 0xb5b   :  { %2312 = vrcp.f32 %v1715_v54  ;;  %v1577_v6 = vsel %vm1574_vm13, %v1576_v42, %v1572_v60  ;;  %vm1723_vm0 = vmor %vm1721_vm15, %vm1722_vm14  ;;  %v1742_v48 = vand.u32 2147483648, %v1715_v54  ;;  %vm1736_vm3 = vweird.f32 %v1715_v54 }
 0xb5c   :  { %v1718_v57 = vsub.f32 1.0, %v1717_v33  ;;  %v1578_v53 = vmul.f32 %v2889_v58, %v1577_v6  ;;  %v1740_v24 = vand.u32 2147483647, %v1715_v54 }
 0xb5d   :  { %v1604_v62 = vpop.f32.mrf.mxu1  ;;  %v1743_v25 = vor.u32 1.1754944e-38, %v1742_v48 }
 0xb5e   :  { %1627 = vmatpush.msra.mxu2 %v1604_v62  ;;  %v1719_v3 = vmul.f32 %v2311_v50, %v1718_v57  ;;  %vm1741_vm6 = vcmp.eq.f32.partialorder %v1740_v24, 8.507059e+37 }
 0xb60   :  { %1628 = vmatpush.msra.mxu2 %v1601_v47  ;;  %v1720_v7 = vadd.f32 %v2311_v50, %v1719_v3 }
 0xb61   :  { %v2313_v40 = vpop.eup %2312  ;;  %2194 = vmatmul.msk.f32.vlgmr.msra.gmra.mxu2 %vm305_vm12, %v1563_v0  ;;  %v1861_v0 = vld [vmem:[#allocation7 + $0x20] sm:$0xff] }
 0xb62   :  { %v1732_v5 = vmul.f32 %v2313_v40, %v1715_v54  ;;  %v1724_v13 = vsel %vm1723_vm0, %v2311_v50, %v1720_v7  ;;  %vm1737_vm2 = vweird.f32 %v2313_v40 }
 0xb63   :  { %v1729_v11 = vsel %vm1726_vm1, %v1728_v20, %v1724_v13  ;;  %vm1738_vm5 = vmor %vm1736_vm3, %vm1737_vm2 }
 0xb64   :  { %v1733_v8 = vsub.f32 1.0, %v1732_v5  ;;  %v1730_v23 = vmul.f32 %v2896_v4, %v1729_v11  ;;  %v2929_v4 = vld [vmem:[%s3030_s8 + $0x8] sm:$0xff] }
 0xb65   :  { %v1768_v2 = vpop.f32.mrf.mxu1  ;;  %v1805_v36 = vperm.slane %v2929_v4, 0 }
 0xb66   :  { %v1734_v18 = vmul.f32 %v2313_v40, %v1733_v8 }
 0xb68   :  { %v1735_v9 = vadd.f32 %v2313_v40, %v1734_v18  ;;  %v1854_v18 = vperm.slane %v2929_v4, 1 }
 0xb69   :  { %2195 = vmatmul.msk.f32.gmra.mxu2 %vm305_vm12, %v1578_v53  ;;  %v1465_v29 = vpop.f32.mrf.mxu2 }
 0xb6a   :  { %v1739_v58 = vsel %vm1738_vm5, %v2313_v40, %v1735_v9  ;;  %v1466_v26 = vadd.f32 %v1465_v29, %v2912_v59  ;;  %v1857_v9 = vperm.slane %v2929_v4, 2 }
 0xb6b   :  { %v1744_v27 = vsel %vm1741_vm6, %v1743_v25, %v1739_v58 }
 0xb6c   :  { %v1745_v28 = vmul.f32 %v2903_v15, %v1744_v27 }
 0xb6d   :  { %v1771_v22 = vpop.f32.mrf.mxu1 }
 0xb6e   :  { %1794 = vmatpush.msrb.mxu2 %v1771_v22 }
 0xb70   :  { %1795 = vmatpush.msrb.mxu2 %v1768_v2 }
 0xb71   :  { %2204 = vmatmul.msk.f32.vlgmr.msrb.gmra.mxu2 %vm305_vm12, %v1730_v23 }
 0xb79   :  { %2205 = vmatmul.msk.f32.gmra.mxu2 %vm305_vm12, %v1745_v28 }
 0xbd3   :  { %v1468_v30 = vpop.f32.mrf.mxu2 }
 0xbd4   :  { %v1469_v15 = vadd.f32 %v1468_v30, %v2914_v35 }
 0xbe4   :  { %v1630_v61 = vpop.f32.mrf.mxu2 }
 0xbe5   :  { %v1636_v41 = vadd.f32 %v1630_v61, %v1466_v26  ;;  %v2215_v61 = vld [vmem:[%s3029_s7 + $0x78] sm:$0xff]  ;;  %v2213_v26 = vld [vmem:[%s3029_s7 + $0x68] sm:$0xff] }
 0xbe6   :  { %1937 = vmatpush.msra.mxu0 %v2215_v61 }
 0xbec   :  { %v1633_v32 = vpop.f32.mrf.mxu2 }
 0xbed   :  { %v1637_v44 = vadd.f32 %v1633_v32, %v1469_v15  ;;  %v2214_v32 = vld [vmem:[%s3029_s7 + $0x70] sm:$0xff]  ;;  %v1865_v15 = vperm.slane %v2929_v4, 3 }
 0xbee   :  { %1938 = vmatpush.msra.mxu0 %v2214_v32 }
 0xbf0   :  { %1939 = vmatpush.msra.mxu0 %v2213_v26  ;;  %v2033_v26 = vld [vmem:[%s3031_s9] sm:$0xff] }
 0xbf4   :  { %v1797_v21 = vpop.f32.mrf.mxu2 }
 0xbf5   :  { %v1803_v31 = vadd.f32 %v1797_v21, %v1636_v41  ;;  %v2212_v41 = vld [vmem:[%s3029_s7 + $0x60] sm:$0xff]  ;;  %v2210_v21 = vld [vmem:[%s3029_s7 + $0x50] sm:$0xff] }
 0xbf6   :  { %1940 = vmatpush.msra.mxu0 %v2212_v41 }
 0xbf7   :  { %v1806_v38 = vadd.f32 %v1805_v36, %v1803_v31  ;;  %v2209_v31 = vld [vmem:[%s3029_s7 + $0x48] sm:$0xff] }
 0xbf9   :  { %v1808_v39 = vadd.f32 %v1806_v38, %v2770_v14  ;;  %v2208_v38 = vld [vmem:[%s3029_s7 + $0x40] sm:$0xff] }
 0xbfb   :  { %v1810_v46 = vsel %vm155_vm4, %v1808_v39, 0.0 }
 0xbfc   :  { %1811 = vadd.xlane.f32.xlu0 %v1810_v46  ;;  %v1800_v47 = vpop.f32.mrf.mxu2 }
 0xbfd   :  { %v1804_v43 = vadd.f32 %v1800_v47, %v1637_v44 }
 0xbff   :  { %v1807_v49 = vadd.f32 %v1805_v36, %v1804_v43  ;;  %v2211_v36 = vld [vmem:[%s3029_s7 + $0x58] sm:$0xff] }
 0xc00   :  { %1941 = vmatpush.msra.mxu0 %v2211_v36 }
 0xc01   :  { %v1809_v50 = vadd.f32 %v1807_v49, %v2776_v45  ;;  %v1864_v45 = vld [vmem:[#allocation7 + $0x38] sm:$0xff] }
 0xc02   :  { %1884 = vmatpush.msrb.mxu3 %v1864_v45  ;;  %1942 = vmatpush.msra.mxu0 %v2210_v21 }
 0xc03   :  { %v1813_v59 = vsel %vm155_vm4, %v1809_v50, 0.0 }
 0xc04   :  { %1814 = vadd.xlane.f32.xlu1 %v1813_v59  ;;  %1885 = vmatpush.msrb.mxu3 %v1863_v34 }
 0xc05   :  { %1943 = vmatpush.msra.mxu0 %v2209_v31 }
 0xc06   :  { %1886 = vmatpush.msrb.mxu3 %v1862_v63 }
 0xc07   :  { %1944 = vmatpush.msra.mxu0 %v2208_v38 }
 0xc08   :  { %1887 = vmatpush.msrb.mxu3 %v1861_v0 }
 0xc6f   :  { %v1812_v51 = vpop.xlane.xlu0 %1811 }
 0xc70   :  { %v1816_v52 = vmul.f32 %v1812_v51, %v2537_v37 }
 0xc72   :  { %v1818_v55 = vsub.f32 %v1808_v39, %v1816_v52 }
 0xc74   :  { %v1820_v33 = vmul.f32 %v1818_v55, %v1818_v55 }
 0xc76   :  { %v1822_v35 = vsel %vm155_vm4, %v1820_v33, 0.0 }
 0xc77   :  { %1823 = vadd.xlane.f32.xlu2 %v1822_v35  ;;  %v1815_v14 = vpop.xlane.xlu1 %1814 }
 0xc78   :  { %v1817_v54 = vmul.f32 %v1815_v14, %v2537_v37 }
 0xc7a   :  { %v1819_v56 = vsub.f32 %v1809_v50, %v1817_v54 }
 0xc7c   :  { %v1821_v57 = vmul.f32 %v1819_v56, %v1819_v56 }
 0xc7e   :  { %v1825_v62 = vsel %vm155_vm4, %v1821_v57, 0.0 }
 0xc7f   :  { %1826 = vadd.xlane.f32.xlu0 %v1825_v62 }
 0xcea   :  { %v1824_v1 = vpop.xlane.xlu2 %1823 }
 0xceb   :  { %v1828_v40 = vmul.f32 %v1824_v1, %v2537_v37  ;;  %v1922_v1 = vperm.slane %v2929_v4, 4 }
 0xced   :  { %v1830_v3 = vadd.f32 1e-12, %v1828_v40 }
 0xcef   :  { %2314 = vrsqrt.f32 %v1830_v3  ;;  %vm1838_vm9 = vweird.f32 %v1830_v3 }
 0xcf2   :  { %v1827_v60 = vpop.xlane.xlu0 %1826 }
 0xcf3   :  { %v1829_v42 = vmul.f32 %v1827_v60, %v2537_v37 }
 0xcf5   :  { %v2315_v5 = vpop.eup %2314  ;;  %v1831_v6 = vadd.f32 1e-12, %v1829_v42 }
 0xcf6   :  { %v1833_v7 = vmul.f32 %v2315_v5, %v1830_v3  ;;  %vm1839_vm7 = vweird.f32 %v2315_v5 }
 0xcf7   :  { %2316 = vrsqrt.f32 %v1831_v6  ;;  %vm1840_vm10 = vmor %vm1838_vm9, %vm1839_vm7  ;;  %vm1848_vm13 = vweird.f32 %v1831_v6 }
 0xcf8   :  { %v1834_v8 = vmul.f32 %v2315_v5, %v1833_v7 }
 0xcfa   :  { %v1835_v2 = vmul.f32 0.5, %v1834_v8 }
 0xcfc   :  { %v1836_v10 = vsub.f32 1.5, %v1835_v2 }
 0xcfd   :  { %v2317_v12 = vpop.eup %2316 }
 0xcfe   :  { %v1837_v53 = vmul.f32 %v2315_v5, %v1836_v10  ;;  %v1843_v13 = vmul.f32 %v2317_v12, %v1831_v6  ;;  %vm1849_vm11 = vweird.f32 %v2317_v12 }
 0xcff   :  { %vm1850_vm14 = vmor %vm1848_vm13, %vm1849_vm11 }
 0xd00   :  { %v1841_v20 = vsel %vm1840_vm10, %v2315_v5, %v1837_v53  ;;  %v1844_v11 = vmul.f32 %v2317_v12, %v1843_v13 }
 0xd01   :  { %v1852_v22 = vmul.f32 %v1841_v20, %v1818_v55 }
 0xd02   :  { %v1845_v48 = vmul.f32 0.5, %v1844_v11 }
 0xd03   :  { %v1855_v23 = vmul.f32 %v1854_v18, %v1852_v22 }
 0xd04   :  { %v1846_v24 = vsub.f32 1.5, %v1845_v48 }
 0xd05   :  { %v1858_v58 = vadd.f32 %v1857_v9, %v1855_v23 }
 0xd06   :  { %v1847_v25 = vmul.f32 %v2317_v12, %v1846_v24 }
 0xd07   :  { %2206 = vmatmul.msk.f32.vlgmr.msrb.gmra.mxu3 %vm155_vm4, %v1858_v58 }
 0xd08   :  { %v1851_v27 = vsel %vm1850_vm14, %v2317_v12, %v1847_v25  ;;  %v2036_v25 = vld [vmem:[%s3031_s9 + $0x18] sm:$0xff] }
 0xd09   :  { %v1853_v28 = vmul.f32 %v1851_v27, %v1819_v56  ;;  %v2035_v27 = vld [vmem:[%s3031_s9 + $0x10] sm:$0xff]  ;;  %2053 = vmatpush.msra.mxu2 %v2036_v25 }
 0xd0b   :  { %v1856_v29 = vmul.f32 %v1854_v18, %v1853_v28  ;;  %2054 = vmatpush.msra.mxu2 %v2035_v27 }
 0xd0d   :  { %v1859_v30 = vadd.f32 %v1857_v9, %v1856_v29  ;;  %v2034_v29 = vld [vmem:[%s3031_s9 + $0x8] sm:$0xff] }
 0xd0e   :  { %2055 = vmatpush.msra.mxu2 %v2034_v29 }
 0xd0f   :  { %2207 = vmatmul.msk.f32.gmra.mxu3 %vm155_vm4, %v1859_v30 }
 0xd10   :  { %2056 = vmatpush.msra.mxu2 %v2033_v26 }
 0xd8a   :  { %v1889_v39 = vpop.f32.mrf.mxu3 }
 0xd8b   :  { %v1890_v44 = vadd.f32 %v1889_v39, %v1865_v15 }
 0xd8d   :  { %v1897_v46 = vmul.f32 0.044715, %v1890_v44  ;;  %v1895_v56 = vmul.f32 0.5, %v1890_v44 }
 0xd8f   :  { %v1899_v47 = vmul.f32 %v1897_v46, %v1890_v44 }
 0xd91   :  { %v1901_v43 = vmul.f32 %v1899_v47, %v1890_v44 }
 0xd92   :  { %v1892_v49 = vpop.f32.mrf.mxu3 }
 0xd93   :  { %v1903_v50 = vadd.f32 %v1901_v43, %v1890_v44  ;;  %v1893_v59 = vadd.f32 %v1892_v49, %v1865_v15  ;;  %v2005_v44 = vshrl.u32 %v91_v16, 7  ;;  %v1998_v49 = vperm.slane %v2929_v4, 5 }
 0xd95   :  { %v1905_v51 = vmul.f32 0.7978846, %v1903_v50  ;;  %v1898_v52 = vmul.f32 0.044715, %v1893_v59  ;;  %v1896_v34 = vmul.f32 0.5, %v1893_v59 }
 0xd97   :  { %2318 = vtanh.f32 %v1905_v51  ;;  %v1900_v55 = vmul.f32 %v1898_v52, %v1893_v59  ;;  %v2006_v51 = vmul.u32 8, %v2005_v44 }
 0xd99   :  { %v1902_v33 = vmul.f32 %v1900_v55, %v1893_v59  ;;  %vm2007_vm5 = vcmp.eq.s32.totalorder %v2523_v17, %v2006_v51  ;;  %v2063_v17 = vld [vmem:[%s3032_s10 + $0x8] sm:$0xff] }
 0xd9b   :  { %v1904_v35 = vadd.f32 %v1902_v33, %v1893_v59  ;;  %v2001_v33 = vperm.slane %v2929_v4, 6  ;;  %v2064_v4 = vld [vmem:[%s3032_s10 + $0x10] sm:$0xff] }
 0xd9d   :  { %v2319_v14 = vpop.eup %2318  ;;  %v1906_v54 = vmul.f32 0.7978846, %v1904_v35 }
 0xd9e   :  { %v1909_v57 = vadd.f32 1.0, %v2319_v14 }
 0xd9f   :  { %2320 = vtanh.f32 %v1906_v54  ;;  %v2218_v54 = vsel %vm2007_vm5, 1.0, %v2439_v19  ;;  %v2062_v19 = vld [vmem:[%s3032_s10] sm:$0xff] }
 0xda0   :  { %v1911_v62 = vmul.f32 %v1909_v57, %v1895_v56  ;;  %v2065_v57 = vld [vmem:[%s3032_s10 + $0x18] sm:$0xff]  ;;  %s2098_s10 = sshll.u32 %s3034_s12, 4  ;;  %s2099_s10 = int_to_ptr.hbm [resolvable:$true] %s2098_s10 }
 0xda2   :  { %2216 = vmatmul.msk.f32.vlgmr.msra.gmra.mxu0 %vm1026_vm8, %v1911_v62  ;;  %v2330_v62 = vld [vmem:[%s3033_s11] sm:$0xf] }
 0xda5   :  { %v2321_v45 = vpop.eup %2320 }
 0xda6   :  { %v1910_v63 = vadd.f32 1.0, %v2321_v45  ;;  %v2037_v45 = vperm.slane %v2330_v62, 2 }
 0xda8   :  { %v1912_v0 = vmul.f32 %v1910_v63, %v1896_v34 }
 0xdaa   :  { %2217 = vmatmul.msk.f32.gmra.mxu0 %vm1026_vm8, %v1912_v0 }
 0xe1f   :  { %v1946_v40 = vpop.f32.mrf.mxu0 }
 0xe20   :  { %v1947_v3 = vadd.f32 %v1946_v40, %v1922_v1 }
 0xe22   :  { %v1952_v60 = vadd.f32 %v1947_v3, %v1858_v58 }
 0xe24   :  { %v1954_v42 = vsel %vm155_vm4, %v1952_v60, 0.0 }
 0xe25   :  { %1955 = vadd.xlane.f32.xlu2 %v1954_v42 }
 0xe27   :  { %v1949_v5 = vpop.f32.mrf.mxu0 }
 0xe28   :  { %v1950_v6 = vadd.f32 %v1949_v5, %v1922_v1  ;;  %v2066_v1 = vperm.slane %v2330_v62, 3 }
 0xe2a   :  { %v1953_v7 = vadd.f32 %v1950_v6, %v1859_v30 }
 0xe2c   :  { %v1957_v8 = vsel %vm155_vm4, %v1953_v7, 0.0 }
 0xe2d   :  { %1958 = vadd.xlane.f32.xlu1 %v1957_v8 }
 0xe98   :  { %v1956_v2 = vpop.xlane.xlu2 %1955 }
 0xe99   :  { %v1960_v10 = vmul.f32 %v1956_v2, %v2537_v37 }
 0xe9b   :  { %v1962_v12 = vsub.f32 %v1952_v60, %v1960_v10 }
 0xe9d   :  { %v1964_v53 = vmul.f32 %v1962_v12, %v1962_v12 }
 0xe9f   :  { %v1966_v13 = vsel %vm155_vm4, %v1964_v53, 0.0 }
 0xea0   :  { %1967 = vadd.xlane.f32.xlu1 %v1966_v13  ;;  %v1959_v18 = vpop.xlane.xlu1 %1958 }
 0xea1   :  { %v1961_v20 = vmul.f32 %v1959_v18, %v2537_v37 }
 0xea3   :  { %v1963_v11 = vsub.f32 %v1953_v7, %v1961_v20 }
 0xea5   :  { %v1965_v22 = vmul.f32 %v1963_v11, %v1963_v11 }
 0xea7   :  { %v1969_v9 = vsel %vm155_vm4, %v1965_v22, 0.0 }
 0xea8   :  { %1970 = vadd.xlane.f32.xlu0 %v1969_v9 }
 0xf13   :  { %v1968_v48 = vpop.xlane.xlu1 %1967 }
 0xf14   :  { %v1972_v23 = vmul.f32 %v1968_v48, %v2537_v37 }
 0xf16   :  { %v1974_v24 = vadd.f32 1e-12, %v1972_v23 }
 0xf18   :  { %2322 = vrsqrt.f32 %v1974_v24  ;;  %vm1982_vm15 = vweird.f32 %v1974_v24 }
 0xf1b   :  { %v1971_v58 = vpop.xlane.xlu0 %1970 }
 0xf1c   :  { %v1973_v28 = vmul.f32 %v1971_v58, %v2537_v37 }
 0xf1e   :  { %v2323_v30 = vpop.eup %2322  ;;  %v1975_v61 = vadd.f32 1e-12, %v1973_v28 }
 0xf1f   :  { %v1977_v32 = vmul.f32 %v2323_v30, %v1974_v24  ;;  %vm1983_vm8 = vweird.f32 %v2323_v30 }
 0xf20   :  { %2324 = vrsqrt.f32 %v1975_v61  ;;  %vm1984_vm0 = vmor %vm1982_vm15, %vm1983_vm8  ;;  %vm1992_vm2 = vweird.f32 %v1975_v61 }
 0xf21   :  { %v1978_v41 = vmul.f32 %v2323_v30, %v1977_v32 }
 0xf23   :  { %v1979_v36 = vmul.f32 0.5, %v1978_v41 }
 0xf25   :  { %v1980_v21 = vsub.f32 1.5, %v1979_v36 }
 0xf26   :  { %v2325_v37 = vpop.eup %2324 }
 0xf27   :  { %v1987_v31 = vmul.f32 %v2325_v37, %v1975_v61  ;;  %v1981_v38 = vmul.f32 %v2323_v30, %v1980_v21  ;;  %vm1993_vm1 = vweird.f32 %v2325_v37 }
 0xf28   :  { %vm1994_vm3 = vmor %vm1992_vm2, %vm1993_vm1 }
 0xf29   :  { %v1988_v15 = vmul.f32 %v2325_v37, %v1987_v31  ;;  %v1985_v46 = vsel %vm1984_vm0, %v2323_v30, %v1981_v38 }
 0xf2a   :  { %v1996_v50 = vmul.f32 %v1985_v46, %v1962_v12 }
 0xf2b   :  { %v1989_v39 = vmul.f32 0.5, %v1988_v15 }
 0xf2c   :  { %v1999_v35 = vmul.f32 %v1998_v49, %v1996_v50 }
 0xf2d   :  { %v1990_v47 = vsub.f32 1.5, %v1989_v39 }
 0xf2e   :  { %v2002_v16 = vadd.f32 %v2001_v33, %v1999_v35 }
 0xf2f   :  { %v1991_v43 = vmul.f32 %v2325_v37, %v1990_v47 }
 0xf31   :  { %v1995_v59 = vsel %vm1994_vm3, %v2325_v37, %v1991_v43 }
 0xf32   :  { %v1997_v52 = vmul.f32 %v1995_v59, %v1963_v11 }
 0xf34   :  { %v2000_v55 = vmul.f32 %v1998_v49, %v1997_v52 }
 0xf36   :  { %v2003_v14 = vadd.f32 %v2001_v33, %v2000_v55 }
 0xf38   :  { %2027 = vmatpush.msra.mxu1 %v2003_v14 }
 0xf3a   :  { %2028 = vmatpush.msra.mxu1 %v2002_v16 }
 0xf3b   :  { %2219 = vmatmul.msk.f32.vlgmr.msra.gmra.mxu1 %vm305_vm12, %v2218_v54 }
 0xf3c   :  { %2082 = vmatpush.msrb.mxu1 %v2065_v57 }
 0xf3e   :  { %2083 = vmatpush.msrb.mxu1 %v2064_v4 }
 0xf40   :  { %2084 = vmatpush.msrb.mxu1 %v2063_v17 }
 0xf42   :  { %2085 = vmatpush.msrb.mxu1 %v2062_v19 }
 0xfb8   :  { %v2030_v56 = vpop.f32.mrf.mxu1 }
 0xfb9   :  { %2220 = vmatmul.msk.f32.vlgmr.msra.gmra.mxu2 %vm155_vm4, %v2030_v56 }
0x103c   :  { %v2058_v34 = vpop.f32.mrf.mxu2 }
0x103d   :  { %v2059_v63 = vadd.f32 %v2058_v34, %v2037_v45 }
0x103f   :  { %2326 = vtanh.f32 %v2059_v63 }
0x1045   :  { %v2327_v0 = vpop.eup %2326 }
0x1046   :  { %2221 = vmatmul.msk.f32.vlgmr.msrb.gmra.mxu1 %vm155_vm4, %v2327_v0 }
0x10c3   :  { %v2087_v40 = vpop.f32.mrf.mxu1 }
0x10c4   :  { %v2088_v3 = vadd.f32 %v2087_v40, %v2066_v1 }
0x10c6   :  { %2090 = vst [vmem:[#allocation8] sm:$0x3] %v2088_v3 }
0x10c7   :  { %2101 = dma.vmem_to_hbm [thread:$0]  %s2097_s2, 32, %s2099_s10, [#allocation4]  }
0x10c8   :  { %2431 = dma.done.wait [#allocation4], 32  }
0x10c9   :  { %2432 = vsyncadd [#allocation4], 4294967264 }
0x10ca   :  { %2106 = vsyncpa [#allocation3], 1 }
0x10cb   :  { %2107 = vsyncpa [#allocation6], 1 }
0x10cc   :  { %2108 = vsyncpa [#allocation4], 1 }

</bundles_post_ra>
